<compile_context>
chip_gen: v7x
topology: tpu7x:2x2x1
jax: 0.10.0
libtpu: 0.0.40
codegen_flags: <defaults>
</compile_context>

<pallas_src>
import functools

import jax
import jax.numpy as jnp
from jax.experimental import pallas as pl
from jax.experimental.pallas import tpu as pltpu

# Module hyper-parameters (Nw=250 is hard-coded in the PyTorch __init__).
NFEAT = 10
NL = 10
NBANDS = 46
NW = 250
BN_EPS = 1e-5

# Lane / MXU-aligned padded dimensions.
NW_P = 256      # 250 -> 256
NFEAT_P = 128   # 10  -> 128 (lane-dense output)


def _round_up(n, m):
    return ((n + m - 1) // m) * m


def _bf16_valu_available():
    """bf16 elementwise tail only on chips with bf16 VALUs (v6e / v7x)."""
    try:
        kind = jax.devices()[0].device_kind.lower()
    except Exception:
        return True
    return not any(t in kind for t in ("v2", "v3", "v4", "v5"))


_BF16_TAIL = _bf16_valu_available()


def encoder_kernel(x_ref, w0_ref, b0_ref, wh_ref, bh_ref, wl_ref, bl_ref,
                   out_ref, *, bf16_tail):
    """Whole Encoder forward for one batch tile held in VMEM.

    Shapes:
      x_ref   (TB, NBANDS)      bf16
      w0_ref  (NBANDS, NW_P)    bf16      b0_ref (1, NW_P)  f32
      wh_ref  (NL, NW_P, NW_P)  bf16      bh_ref (NL, NW_P) f32   (BN folded in)
      wl_ref  (NW_P, NFEAT_P)   bf16      bl_ref (1, NFEAT_P) f32
      out_ref (TB, NFEAT_P)     f32
    """
    # First Linear: (TB, 46) @ (46, 256) on the MXU, f32 accumulation.
    h32 = jnp.dot(x_ref[...], w0_ref[...], preferred_element_type=jnp.float32)
    if bf16_tail:
        h = h32.astype(jnp.bfloat16) + b0_ref[...].astype(jnp.bfloat16)
    else:
        h = h32 + b0_ref[...]

    # Static unroll over the NL hidden blocks (BatchNorm folded in, Dropout identity).
    for i in range(NL):
        a = h if bf16_tail else h.astype(jnp.bfloat16)
        hi = jnp.dot(a, wh_ref[i], preferred_element_type=jnp.float32)
        bi = bh_ref[pl.ds(i, 1), :]
        if bf16_tail:
            h = jnp.maximum(hi.astype(jnp.bfloat16) + bi.astype(jnp.bfloat16), 0.0)
        else:
            h = jnp.maximum(hi + bi, 0.0)

    # Last Linear, also bf16 on the MXU with f32 accumulation.
    a = h if bf16_tail else h.astype(jnp.bfloat16)
    out_ref[...] = (jnp.dot(a, wl_ref[...], preferred_element_type=jnp.float32)
                    + bl_ref[...])


def _pick_tile(batch):
    """Batch tile: large (<=1024), multiple of 16, and >=2 grid steps when possible."""
    tb = min(1024, _round_up(batch, 16))
    if batch >= 32:
        # Cap at ~half the batch so the parallel axis shards across both TCs (v7x).
        tb = min(tb, _round_up((batch + 1) // 2, 16))
    return tb


@jax.jit
def encoder_forward(x, w0p, b0p, whp, bhp, wlp, blp):
    """x: (B, NBANDS) f32; params must come from prepare_params()."""
    B = x.shape[0]
    tb = _pick_tile(B)
    bp = _round_up(B, tb)
    nb = bp // tb

    # Only a bf16 cast (and, if needed, a small row pad) — no lane-padded f32 copy.
    xb = x.astype(jnp.bfloat16)
    if bp != B:
        xb = jnp.zeros((bp, NBANDS), jnp.bfloat16).at[:B].set(xb)

    param_bytes = (w0p.size * 2 + b0p.size * 4 + whp.size * 2 + bhp.size * 4
                   + wlp.size * 2 + blp.size * 4)
    cost = pl.CostEstimate(
        flops=2 * bp * (NBANDS * NW_P + NL * NW_P * NW_P + NW_P * NFEAT_P),
        transcendentals=0,
        bytes_accessed=xb.size * 2 + bp * NFEAT_P * 4 + param_bytes,
    )

    kernel = functools.partial(encoder_kernel, bf16_tail=_BF16_TAIL)

    out = pl.pallas_call(
        kernel,
        out_shape=jax.ShapeDtypeStruct((bp, NFEAT_P), jnp.float32),
        grid_spec=pltpu.PrefetchScalarGridSpec(
            num_scalar_prefetch=0,
            grid=(nb,),
            in_specs=[
                pl.BlockSpec((tb, NBANDS), lambda i: (i, 0)),          # x tile (bf16)
                pl.BlockSpec((NBANDS, NW_P), lambda i: (0, 0)),        # w0 (resident)
                pl.BlockSpec((1, NW_P), lambda i: (0, 0)),             # b0
                pl.BlockSpec((NL, NW_P, NW_P), lambda i: (0, 0, 0)),   # wh (resident)
                pl.BlockSpec((NL, NW_P), lambda i: (0, 0)),            # bh
                pl.BlockSpec((NW_P, NFEAT_P), lambda i: (0, 0)),       # wl (bf16)
                pl.BlockSpec((1, NFEAT_P), lambda i: (0, 0)),          # bl
            ],
            out_specs=pl.BlockSpec((tb, NFEAT_P), lambda i: (i, 0)),
        ),
        compiler_params=pltpu.CompilerParams(
            dimension_semantics=("parallel",),   # shard batch tiles across TCs
        ),
        cost_estimate=cost,
    )(xb, w0p, b0p, whp, bhp, wlp, blp)

    return out[:B, :NFEAT]


def prepare_params(w0, b0, gamma, beta, wh, bh, wl, bl):
    """Fold eval-mode BatchNorm into the hidden Linears, pad to aligned shapes,
    and cast all matmul weights to bf16 (one-time cost, amortized over all calls)."""
    inv_std = 1.0 / jnp.sqrt(jnp.float32(1.0 + BN_EPS))
    scale = gamma * inv_std                                   # (NL, NW)
    wh_f = scale[:, :, None] * wh                             # diag(scale) @ Wi
    bh_f = bh + jnp.einsum("lk,lkn->ln", beta, wh)            # bi + beta @ Wi

    w0p = (jnp.zeros((NBANDS, NW_P), jnp.float32)
           .at[:, :NW].set(w0).astype(jnp.bfloat16))
    b0p = jnp.zeros((1, NW_P), jnp.float32).at[:, :NW].set(b0)
    whp = (jnp.zeros((NL, NW_P, NW_P), jnp.float32)
           .at[:, :NW, :NW].set(wh_f).astype(jnp.bfloat16))
    bhp = jnp.zeros((NL, NW_P), jnp.float32).at[:, :NW].set(bh_f)
    wlp = (jnp.zeros((NW_P, NFEAT_P), jnp.float32)
           .at[:NW, :NFEAT].set(wl).astype(jnp.bfloat16))
    blp = jnp.zeros((1, NFEAT_P), jnp.float32).at[:, :NFEAT].set(bl)
    return w0p, b0p, whp, bhp, wlp, blp


def init_params(key):
    """Deterministic parameter init mimicking nn.Linear's U(-1/sqrt(fan_in), ...)."""
    def linear(k, fan_in, fan_out):
        kw, kb = jax.random.split(k)
        bound = 1.0 / jnp.sqrt(jnp.float32(fan_in))
        w = jax.random.uniform(kw, (fan_in, fan_out), jnp.float32, -bound, bound)
        b = jax.random.uniform(kb, (1, fan_out), jnp.float32, -bound, bound)
        return w, b

    keys = jax.random.split(key, NL + 2)
    w0, b0 = linear(keys[0], NBANDS, NW)

    wh_list, bh_list = [], []
    for i in range(NL):
        wi, bi = linear(keys[1 + i], NW, NW)
        wh_list.append(wi)
        bh_list.append(bi[0])
    wh = jnp.stack(wh_list, axis=0)            # (NL, NW, NW)
    bh = jnp.stack(bh_list, axis=0)            # (NL, NW)

    # BatchNorm1d affine params at init: gamma=1, beta=0.
    gamma = jnp.ones((NL, NW), jnp.float32)
    beta = jnp.zeros((NL, NW), jnp.float32)

    wl, bl = linear(keys[NL + 1], NW, NFEAT)
    return w0, b0, gamma, beta, wh, bh, wl, bl


def encoder_reference(x, w0, b0, gamma, beta, wh, bh, wl, bl):
    """Pure-JAX f32 reference with the original (unfolded, unpadded) semantics."""
    h = x @ w0 + b0
    inv_std = 1.0 / jnp.sqrt(1.0 + BN_EPS)
    for i in range(NL):
        hb = h * (gamma[i][None, :] * inv_std) + beta[i][None, :]
        h = hb @ wh[i] + bh[i][None, :]
        h = jnp.maximum(h, 0.0)
    return h @ wl + bl


def encoder_reference_prepared(x, w0p, b0p, whp, bhp, wlp, blp,
                               bf16_tail=_BF16_TAIL):
    """Pure-JAX reference matching the kernel's bf16/folded/padded numerics."""
    xb = x.astype(jnp.bfloat16)
    h32 = jnp.dot(xb, w0p, preferred_element_type=jnp.float32)
    if bf16_tail:
        h = h32.astype(jnp.bfloat16) + b0p.astype(jnp.bfloat16)
    else:
        h = h32 + b0p
    for i in range(NL):
        a = h if bf16_tail else h.astype(jnp.bfloat16)
        hi = jnp.dot(a, whp[i], preferred_element_type=jnp.float32)
        bi = bhp[i][None, :]
        if bf16_tail:
            h = jnp.maximum(hi.astype(jnp.bfloat16) + bi.astype(jnp.bfloat16), 0.0)
        else:
            h = jnp.maximum(hi + bi, 0.0)
    a = h if bf16_tail else h.astype(jnp.bfloat16)
    out = jnp.dot(a, wlp, preferred_element_type=jnp.float32) + blp
    return out[:, :NFEAT]


if __name__ == "__main__":
    key = jax.random.PRNGKey(0)
    kx, kp = jax.random.split(key)

    raw_params = init_params(kp)
    prepared = prepare_params(*raw_params)

    # Two batch sizes: tiny (single tile) and one that exercises >=2 grid steps
    # plus batch-row padding.
    for B in (8, 48):
        x = jax.random.normal(jax.random.fold_in(kx, B), (B, NBANDS), jnp.float32)

        out = jax.block_until_ready(encoder_forward(x, *prepared))
        assert out.shape == (B, NFEAT), out.shape

        # Exact-numerics check (same bf16/fold/pad recipe in pure JAX).
        ref_matched = encoder_reference_prepared(x, *prepared)
        err_matched = float(jnp.max(jnp.abs(out - ref_matched)))
        assert err_matched < 2e-3, (
            f"B={B}: kernel vs matched ref: max abs err {err_matched}")

        # Loose check against the original f32 eval-mode semantics.
        ref_f32 = encoder_reference(x, *raw_params)
        err_f32 = float(jnp.max(jnp.abs(out - ref_f32)))
        assert err_f32 < 1e-1, (
            f"B={B}: kernel vs f32 ref: max abs err {err_f32}")

    print("KERNEL_OK")
</pallas_src>

<mosaic_0001>
module attributes {stable_mosaic.version = 11 : i64} {
  func.func @encoder_kernel(%arg0: i32, %arg1: memref<16x46xbf16, #tpu.memory_space<vmem>>, %arg2: memref<46x256xbf16, #tpu.memory_space<vmem>>, %arg3: memref<1x256xf32, #tpu.memory_space<vmem>>, %arg4: memref<10x256x256xbf16, #tpu.memory_space<vmem>>, %arg5: memref<10x256xf32, #tpu.memory_space<vmem>>, %arg6: memref<256x128xbf16, #tpu.memory_space<vmem>>, %arg7: memref<1x128xf32, #tpu.memory_space<vmem>>, %arg8: memref<16x128xf32, #tpu.memory_space<vmem>>) attributes {dimension_semantics = [#tpu.dimension_semantics<parallel>], iteration_bounds = array<i64: 1>, scalar_prefetch = 0 : i64, scratch_operands = 0 : i64, tpu.core_type = #tpu.core_type<tc>, window_params = [{transform_indices = @transform_0, window_bounds = array<i64: 16, 46>}, {pipeline_mode = #tpu.pipeline_mode<synchronous>, transform_indices = @transform_1, window_bounds = array<i64: 46, 256>}, {pipeline_mode = #tpu.pipeline_mode<synchronous>, transform_indices = @transform_2, window_bounds = array<i64: 1, 256>}, {pipeline_mode = #tpu.pipeline_mode<synchronous>, transform_indices = @transform_3, window_bounds = array<i64: 10, 256, 256>}, {pipeline_mode = #tpu.pipeline_mode<synchronous>, transform_indices = @transform_4, window_bounds = array<i64: 10, 256>}, {pipeline_mode = #tpu.pipeline_mode<synchronous>, transform_indices = @transform_5, window_bounds = array<i64: 256, 128>}, {pipeline_mode = #tpu.pipeline_mode<synchronous>, transform_indices = @transform_6, window_bounds = array<i64: 1, 128>}, {transform_indices = @transform_7, window_bounds = array<i64: 16, 128>}]} {
    %c0 = arith.constant 0 : index
    %c0_0 = arith.constant 0 : index
    %0 = vector.load %arg1[%c0, %c0_0] : memref<16x46xbf16, #tpu.memory_space<vmem>>, vector<16x46xbf16>
    %c0_1 = arith.constant 0 : index
    %c0_2 = arith.constant 0 : index
    %1 = vector.load %arg2[%c0_1, %c0_2] : memref<46x256xbf16, #tpu.memory_space<vmem>>, vector<46x256xbf16>
    %cst = arith.constant dense<0.000000e+00> : vector<16x256xf32>
    %2 = tpu.matmul %0, %1, %cst {dimension_numbers = #tpu.dot_dimension_numbers<[1], [0], [0], [1], [0, 0, 1, 1], [], []>} : vector<16x46xbf16>, vector<46x256xbf16>, vector<16x256xf32> -> vector<16x256xf32>
    %3 = arith.truncf %2 : vector<16x256xf32> to vector<16x256xbf16>
    %c0_3 = arith.constant 0 : index
    %c0_4 = arith.constant 0 : index
    %4 = vector.load %arg3[%c0_3, %c0_4] : memref<1x256xf32, #tpu.memory_space<vmem>>, vector<1x256xf32>
    %5 = arith.truncf %4 : vector<1x256xf32> to vector<1x256xbf16>
    %6 = vector.broadcast %5 : vector<1x256xbf16> to vector<16x256xbf16>
    %7 = arith.addf %3, %6 : vector<16x256xbf16>
    %c0_5 = arith.constant 0 : index
    %c0_6 = arith.constant 0 : index
    %c0_7 = arith.constant 0 : index
    %8 = vector.load %arg4[%c0_5, %c0_6, %c0_7] : memref<10x256x256xbf16, #tpu.memory_space<vmem>>, vector<1x256x256xbf16>
    %9 = vector.shape_cast %8 : vector<1x256x256xbf16> to vector<256x256xbf16>
    %cst_8 = arith.constant dense<0.000000e+00> : vector<16x256xf32>
    %10 = tpu.matmul %7, %9, %cst_8 {dimension_numbers = #tpu.dot_dimension_numbers<[1], [0], [0], [1], [0, 0, 1, 1], [], []>} : vector<16x256xbf16>, vector<256x256xbf16>, vector<16x256xf32> -> vector<16x256xf32>
    %c0_9 = arith.constant 0 : index
    %c0_10 = arith.constant 0 : index
    %11 = vector.load %arg5[%c0_9, %c0_10] : memref<10x256xf32, #tpu.memory_space<vmem>>, vector<1x256xf32>
    %12 = arith.truncf %10 : vector<16x256xf32> to vector<16x256xbf16>
    %13 = arith.truncf %11 : vector<1x256xf32> to vector<1x256xbf16>
    %14 = vector.broadcast %13 : vector<1x256xbf16> to vector<16x256xbf16>
    %15 = arith.addf %12, %14 : vector<16x256xbf16>
    %cst_11 = arith.constant 0.000000e+00 : bf16
    %16 = vector.broadcast %cst_11 : bf16 to vector<16x256xbf16>
    %17 = arith.maximumf %15, %16 : vector<16x256xbf16>
    %c1 = arith.constant 1 : index
    %c0_12 = arith.constant 0 : index
    %c0_13 = arith.constant 0 : index
    %18 = vector.load %arg4[%c1, %c0_12, %c0_13] : memref<10x256x256xbf16, #tpu.memory_space<vmem>>, vector<1x256x256xbf16>
    %19 = vector.shape_cast %18 : vector<1x256x256xbf16> to vector<256x256xbf16>
    %cst_14 = arith.constant dense<0.000000e+00> : vector<16x256xf32>
    %20 = tpu.matmul %17, %19, %cst_14 {dimension_numbers = #tpu.dot_dimension_numbers<[1], [0], [0], [1], [0, 0, 1, 1], [], []>} : vector<16x256xbf16>, vector<256x256xbf16>, vector<16x256xf32> -> vector<16x256xf32>
    %c1_15 = arith.constant 1 : index
    %c0_16 = arith.constant 0 : index
    %21 = vector.load %arg5[%c1_15, %c0_16] : memref<10x256xf32, #tpu.memory_space<vmem>>, vector<1x256xf32>
    %22 = arith.truncf %20 : vector<16x256xf32> to vector<16x256xbf16>
    %23 = arith.truncf %21 : vector<1x256xf32> to vector<1x256xbf16>
    %24 = vector.broadcast %23 : vector<1x256xbf16> to vector<16x256xbf16>
    %25 = arith.addf %22, %24 : vector<16x256xbf16>
    %cst_17 = arith.constant 0.000000e+00 : bf16
    %26 = vector.broadcast %cst_17 : bf16 to vector<16x256xbf16>
    %27 = arith.maximumf %25, %26 : vector<16x256xbf16>
    %c2 = arith.constant 2 : index
    %c0_18 = arith.constant 0 : index
    %c0_19 = arith.constant 0 : index
    %28 = vector.load %arg4[%c2, %c0_18, %c0_19] : memref<10x256x256xbf16, #tpu.memory_space<vmem>>, vector<1x256x256xbf16>
    %29 = vector.shape_cast %28 : vector<1x256x256xbf16> to vector<256x256xbf16>
    %cst_20 = arith.constant dense<0.000000e+00> : vector<16x256xf32>
    %30 = tpu.matmul %27, %29, %cst_20 {dimension_numbers = #tpu.dot_dimension_numbers<[1], [0], [0], [1], [0, 0, 1, 1], [], []>} : vector<16x256xbf16>, vector<256x256xbf16>, vector<16x256xf32> -> vector<16x256xf32>
    %c2_21 = arith.constant 2 : index
    %c0_22 = arith.constant 0 : index
    %31 = vector.load %arg5[%c2_21, %c0_22] : memref<10x256xf32, #tpu.memory_space<vmem>>, vector<1x256xf32>
    %32 = arith.truncf %30 : vector<16x256xf32> to vector<16x256xbf16>
    %33 = arith.truncf %31 : vector<1x256xf32> to vector<1x256xbf16>
    %34 = vector.broadcast %33 : vector<1x256xbf16> to vector<16x256xbf16>
    %35 = arith.addf %32, %34 : vector<16x256xbf16>
    %cst_23 = arith.constant 0.000000e+00 : bf16
    %36 = vector.broadcast %cst_23 : bf16 to vector<16x256xbf16>
    %37 = arith.maximumf %35, %36 : vector<16x256xbf16>
    %c3 = arith.constant 3 : index
    %c0_24 = arith.constant 0 : index
    %c0_25 = arith.constant 0 : index
    %38 = vector.load %arg4[%c3, %c0_24, %c0_25] : memref<10x256x256xbf16, #tpu.memory_space<vmem>>, vector<1x256x256xbf16>
    %39 = vector.shape_cast %38 : vector<1x256x256xbf16> to vector<256x256xbf16>
    %cst_26 = arith.constant dense<0.000000e+00> : vector<16x256xf32>
    %40 = tpu.matmul %37, %39, %cst_26 {dimension_numbers = #tpu.dot_dimension_numbers<[1], [0], [0], [1], [0, 0, 1, 1], [], []>} : vector<16x256xbf16>, vector<256x256xbf16>, vector<16x256xf32> -> vector<16x256xf32>
    %c3_27 = arith.constant 3 : index
    %c0_28 = arith.constant 0 : index
    %41 = vector.load %arg5[%c3_27, %c0_28] : memref<10x256xf32, #tpu.memory_space<vmem>>, vector<1x256xf32>
    %42 = arith.truncf %40 : vector<16x256xf32> to vector<16x256xbf16>
    %43 = arith.truncf %41 : vector<1x256xf32> to vector<1x256xbf16>
    %44 = vector.broadcast %43 : vector<1x256xbf16> to vector<16x256xbf16>
    %45 = arith.addf %42, %44 : vector<16x256xbf16>
    %cst_29 = arith.constant 0.000000e+00 : bf16
    %46 = vector.broadcast %cst_29 : bf16 to vector<16x256xbf16>
    %47 = arith.maximumf %45, %46 : vector<16x256xbf16>
    %c4 = arith.constant 4 : index
    %c0_30 = arith.constant 0 : index
    %c0_31 = arith.constant 0 : index
    %48 = vector.load %arg4[%c4, %c0_30, %c0_31] : memref<10x256x256xbf16, #tpu.memory_space<vmem>>, vector<1x256x256xbf16>
    %49 = vector.shape_cast %48 : vector<1x256x256xbf16> to vector<256x256xbf16>
    %cst_32 = arith.constant dense<0.000000e+00> : vector<16x256xf32>
    %50 = tpu.matmul %47, %49, %cst_32 {dimension_numbers = #tpu.dot_dimension_numbers<[1], [0], [0], [1], [0, 0, 1, 1], [], []>} : vector<16x256xbf16>, vector<256x256xbf16>, vector<16x256xf32> -> vector<16x256xf32>
    %c4_33 = arith.constant 4 : index
    %c0_34 = arith.constant 0 : index
    %51 = vector.load %arg5[%c4_33, %c0_34] : memref<10x256xf32, #tpu.memory_space<vmem>>, vector<1x256xf32>
    %52 = arith.truncf %50 : vector<16x256xf32> to vector<16x256xbf16>
    %53 = arith.truncf %51 : vector<1x256xf32> to vector<1x256xbf16>
    %54 = vector.broadcast %53 : vector<1x256xbf16> to vector<16x256xbf16>
    %55 = arith.addf %52, %54 : vector<16x256xbf16>
    %cst_35 = arith.constant 0.000000e+00 : bf16
    %56 = vector.broadcast %cst_35 : bf16 to vector<16x256xbf16>
    %57 = arith.maximumf %55, %56 : vector<16x256xbf16>
    %c5 = arith.constant 5 : index
    %c0_36 = arith.constant 0 : index
    %c0_37 = arith.constant 0 : index
    %58 = vector.load %arg4[%c5, %c0_36, %c0_37] : memref<10x256x256xbf16, #tpu.memory_space<vmem>>, vector<1x256x256xbf16>
    %59 = vector.shape_cast %58 : vector<1x256x256xbf16> to vector<256x256xbf16>
    %cst_38 = arith.constant dense<0.000000e+00> : vector<16x256xf32>
    %60 = tpu.matmul %57, %59, %cst_38 {dimension_numbers = #tpu.dot_dimension_numbers<[1], [0], [0], [1], [0, 0, 1, 1], [], []>} : vector<16x256xbf16>, vector<256x256xbf16>, vector<16x256xf32> -> vector<16x256xf32>
    %c5_39 = arith.constant 5 : index
    %c0_40 = arith.constant 0 : index
    %61 = vector.load %arg5[%c5_39, %c0_40] : memref<10x256xf32, #tpu.memory_space<vmem>>, vector<1x256xf32>
    %62 = arith.truncf %60 : vector<16x256xf32> to vector<16x256xbf16>
    %63 = arith.truncf %61 : vector<1x256xf32> to vector<1x256xbf16>
    %64 = vector.broadcast %63 : vector<1x256xbf16> to vector<16x256xbf16>
    %65 = arith.addf %62, %64 : vector<16x256xbf16>
    %cst_41 = arith.constant 0.000000e+00 : bf16
    %66 = vector.broadcast %cst_41 : bf16 to vector<16x256xbf16>
    %67 = arith.maximumf %65, %66 : vector<16x256xbf16>
    %c6 = arith.constant 6 : index
    %c0_42 = arith.constant 0 : index
    %c0_43 = arith.constant 0 : index
    %68 = vector.load %arg4[%c6, %c0_42, %c0_43] : memref<10x256x256xbf16, #tpu.memory_space<vmem>>, vector<1x256x256xbf16>
    %69 = vector.shape_cast %68 : vector<1x256x256xbf16> to vector<256x256xbf16>
    %cst_44 = arith.constant dense<0.000000e+00> : vector<16x256xf32>
    %70 = tpu.matmul %67, %69, %cst_44 {dimension_numbers = #tpu.dot_dimension_numbers<[1], [0], [0], [1], [0, 0, 1, 1], [], []>} : vector<16x256xbf16>, vector<256x256xbf16>, vector<16x256xf32> -> vector<16x256xf32>
    %c6_45 = arith.constant 6 : index
    %c0_46 = arith.constant 0 : index
    %71 = vector.load %arg5[%c6_45, %c0_46] : memref<10x256xf32, #tpu.memory_space<vmem>>, vector<1x256xf32>
    %72 = arith.truncf %70 : vector<16x256xf32> to vector<16x256xbf16>
    %73 = arith.truncf %71 : vector<1x256xf32> to vector<1x256xbf16>
    %74 = vector.broadcast %73 : vector<1x256xbf16> to vector<16x256xbf16>
    %75 = arith.addf %72, %74 : vector<16x256xbf16>
    %cst_47 = arith.constant 0.000000e+00 : bf16
    %76 = vector.broadcast %cst_47 : bf16 to vector<16x256xbf16>
    %77 = arith.maximumf %75, %76 : vector<16x256xbf16>
    %c7 = arith.constant 7 : index
    %c0_48 = arith.constant 0 : index
    %c0_49 = arith.constant 0 : index
    %78 = vector.load %arg4[%c7, %c0_48, %c0_49] : memref<10x256x256xbf16, #tpu.memory_space<vmem>>, vector<1x256x256xbf16>
    %79 = vector.shape_cast %78 : vector<1x256x256xbf16> to vector<256x256xbf16>
    %cst_50 = arith.constant dense<0.000000e+00> : vector<16x256xf32>
    %80 = tpu.matmul %77, %79, %cst_50 {dimension_numbers = #tpu.dot_dimension_numbers<[1], [0], [0], [1], [0, 0, 1, 1], [], []>} : vector<16x256xbf16>, vector<256x256xbf16>, vector<16x256xf32> -> vector<16x256xf32>
    %c7_51 = arith.constant 7 : index
    %c0_52 = arith.constant 0 : index
    %81 = vector.load %arg5[%c7_51, %c0_52] : memref<10x256xf32, #tpu.memory_space<vmem>>, vector<1x256xf32>
    %82 = arith.truncf %80 : vector<16x256xf32> to vector<16x256xbf16>
    %83 = arith.truncf %81 : vector<1x256xf32> to vector<1x256xbf16>
    %84 = vector.broadcast %83 : vector<1x256xbf16> to vector<16x256xbf16>
    %85 = arith.addf %82, %84 : vector<16x256xbf16>
    %cst_53 = arith.constant 0.000000e+00 : bf16
    %86 = vector.broadcast %cst_53 : bf16 to vector<16x256xbf16>
    %87 = arith.maximumf %85, %86 : vector<16x256xbf16>
    %c8 = arith.constant 8 : index
    %c0_54 = arith.constant 0 : index
    %c0_55 = arith.constant 0 : index
    %88 = vector.load %arg4[%c8, %c0_54, %c0_55] : memref<10x256x256xbf16, #tpu.memory_space<vmem>>, vector<1x256x256xbf16>
    %89 = vector.shape_cast %88 : vector<1x256x256xbf16> to vector<256x256xbf16>
    %cst_56 = arith.constant dense<0.000000e+00> : vector<16x256xf32>
    %90 = tpu.matmul %87, %89, %cst_56 {dimension_numbers = #tpu.dot_dimension_numbers<[1], [0], [0], [1], [0, 0, 1, 1], [], []>} : vector<16x256xbf16>, vector<256x256xbf16>, vector<16x256xf32> -> vector<16x256xf32>
    %c8_57 = arith.constant 8 : index
    %c0_58 = arith.constant 0 : index
    %91 = vector.load %arg5[%c8_57, %c0_58] : memref<10x256xf32, #tpu.memory_space<vmem>>, vector<1x256xf32>
    %92 = arith.truncf %90 : vector<16x256xf32> to vector<16x256xbf16>
    %93 = arith.truncf %91 : vector<1x256xf32> to vector<1x256xbf16>
    %94 = vector.broadcast %93 : vector<1x256xbf16> to vector<16x256xbf16>
    %95 = arith.addf %92, %94 : vector<16x256xbf16>
    %cst_59 = arith.constant 0.000000e+00 : bf16
    %96 = vector.broadcast %cst_59 : bf16 to vector<16x256xbf16>
    %97 = arith.maximumf %95, %96 : vector<16x256xbf16>
    %c9 = arith.constant 9 : index
    %c0_60 = arith.constant 0 : index
    %c0_61 = arith.constant 0 : index
    %98 = vector.load %arg4[%c9, %c0_60, %c0_61] : memref<10x256x256xbf16, #tpu.memory_space<vmem>>, vector<1x256x256xbf16>
    %99 = vector.shape_cast %98 : vector<1x256x256xbf16> to vector<256x256xbf16>
    %cst_62 = arith.constant dense<0.000000e+00> : vector<16x256xf32>
    %100 = tpu.matmul %97, %99, %cst_62 {dimension_numbers = #tpu.dot_dimension_numbers<[1], [0], [0], [1], [0, 0, 1, 1], [], []>} : vector<16x256xbf16>, vector<256x256xbf16>, vector<16x256xf32> -> vector<16x256xf32>
    %c9_63 = arith.constant 9 : index
    %c0_64 = arith.constant 0 : index
    %101 = vector.load %arg5[%c9_63, %c0_64] : memref<10x256xf32, #tpu.memory_space<vmem>>, vector<1x256xf32>
    %102 = arith.truncf %100 : vector<16x256xf32> to vector<16x256xbf16>
    %103 = arith.truncf %101 : vector<1x256xf32> to vector<1x256xbf16>
    %104 = vector.broadcast %103 : vector<1x256xbf16> to vector<16x256xbf16>
    %105 = arith.addf %102, %104 : vector<16x256xbf16>
    %cst_65 = arith.constant 0.000000e+00 : bf16
    %106 = vector.broadcast %cst_65 : bf16 to vector<16x256xbf16>
    %107 = arith.maximumf %105, %106 : vector<16x256xbf16>
    %c0_66 = arith.constant 0 : index
    %c0_67 = arith.constant 0 : index
    %108 = vector.load %arg6[%c0_66, %c0_67] : memref<256x128xbf16, #tpu.memory_space<vmem>>, vector<256x128xbf16>
    %cst_68 = arith.constant dense<0.000000e+00> : vector<16x128xf32>
    %109 = tpu.matmul %107, %108, %cst_68 {dimension_numbers = #tpu.dot_dimension_numbers<[1], [0], [0], [1], [0, 0, 1, 1], [], []>} : vector<16x256xbf16>, vector<256x128xbf16>, vector<16x128xf32> -> vector<16x128xf32>
    %c0_69 = arith.constant 0 : index
    %c0_70 = arith.constant 0 : index
    %110 = vector.load %arg7[%c0_69, %c0_70] : memref<1x128xf32, #tpu.memory_space<vmem>>, vector<1x128xf32>
    %111 = vector.broadcast %110 : vector<1x128xf32> to vector<16x128xf32>
    %112 = arith.addf %109, %111 : vector<16x128xf32>
    %c0_71 = arith.constant 0 : index
    %c0_72 = arith.constant 0 : index
    %113 = vector.load %arg8[%c0_71, %c0_72] : memref<16x128xf32, #tpu.memory_space<vmem>>, vector<16x128xf32>
    tpu.vector_store %arg8[%c0_71, %c0_72], %112 {strides = array<i32>} : memref<16x128xf32, #tpu.memory_space<vmem>>, vector<16x128xf32>,
    return
  }
  func.func @transform_0(%arg0: i32) -> (i32, i32) {
    %c0_i32 = arith.constant 0 : i32
    %c0_i32_0 = arith.constant 0 : i32
    return %arg0, %c0_i32 : i32, i32
  }
  func.func @transform_1(%arg0: i32) -> (i32, i32) {
    %c0_i32 = arith.constant 0 : i32
    %c0_i32_0 = arith.constant 0 : i32
    %c0_i32_1 = arith.constant 0 : i32
    return %c0_i32, %c0_i32_0 : i32, i32
  }
  func.func @transform_2(%arg0: i32) -> (i32, i32) {
    %c0_i32 = arith.constant 0 : i32
    %c0_i32_0 = arith.constant 0 : i32
    %c0_i32_1 = arith.constant 0 : i32
    return %c0_i32, %c0_i32_0 : i32, i32
  }
  func.func @transform_3(%arg0: i32) -> (i32, i32, i32) {
    %c0_i32 = arith.constant 0 : i32
    %c0_i32_0 = arith.constant 0 : i32
    %c0_i32_1 = arith.constant 0 : i32
    %c0_i32_2 = arith.constant 0 : i32
    return %c0_i32, %c0_i32_0, %c0_i32_1 : i32, i32, i32
  }
  func.func @transform_4(%arg0: i32) -> (i32, i32) {
    %c0_i32 = arith.constant 0 : i32
    %c0_i32_0 = arith.constant 0 : i32
    %c0_i32_1 = arith.constant 0 : i32
    return %c0_i32, %c0_i32_0 : i32, i32
  }
  func.func @transform_5(%arg0: i32) -> (i32, i32) {
    %c0_i32 = arith.constant 0 : i32
    %c0_i32_0 = arith.constant 0 : i32
    %c0_i32_1 = arith.constant 0 : i32
    return %c0_i32, %c0_i32_0 : i32, i32
  }
  func.func @transform_6(%arg0: i32) -> (i32, i32) {
    %c0_i32 = arith.constant 0 : i32
    %c0_i32_0 = arith.constant 0 : i32
    %c0_i32_1 = arith.constant 0 : i32
    return %c0_i32, %c0_i32_0 : i32, i32
  }
  func.func @transform_7(%arg0: i32) -> (i32, i32) {
    %c0_i32 = arith.constant 0 : i32
    %c0_i32_0 = arith.constant 0 : i32
    return %arg0, %c0_i32 : i32, i32
  }
}

</mosaic_0001>

<bundles_post_ra>
// kernel: encoder_forward.1
= control target key start
LH: loop header
LB: loop body
LE: loop exit
PB: predicated region body
PF: predicated region fallthrough
CT: control target
= control target key end

     0   :  { %12 = vsyncpa [#allocation3], 0  ;;  %s4363_s0 = inlined_call_operand.vmem [shape: bf16[16,46], index: 0, kind: input, shape index: {}]   ;;  %s4364_s1 = inlined_call_operand.hbm [shape: bf16[46,256], index: 1, kind: input, shape index: {}]   ;;  %s4365_s2 = inlined_call_operand.hbm [shape: f32[1,256], index: 2, kind: input, shape index: {}]   ;;  %s4366_s3 = inlined_call_operand.hbm [shape: bf16[10,256,256], index: 3, kind: input, shape index: {}]   ;;  %s4367_s4 = inlined_call_operand.hbm [shape: f32[10,256], index: 4, kind: input, shape index: {}]   ;;  %s4368_s5 = inlined_call_operand.hbm [shape: bf16[256,128], index: 5, kind: input, shape index: {}]   ;;  %s4369_s6 = inlined_call_operand.hbm [shape: f32[1,128], index: 6, kind: input, shape index: {}]   ;;  %s4370_s7 = inlined_call_operand.vmem [shape: f32[16,128], index: 7, kind: output, shape index: {}]  }
   0x1   :  { %13 = vsyncpa [#allocation5], 0 }
   0x2   :  { %14 = vsyncpa [#allocation8], 0 }
   0x3   :  { %15 = vsyncpa [#allocation11], 0  ;;  %s4153_s24 = smov [#allocation4]   ;;  %s4154_s26 = smov [#allocation7]  }
   0x4   :  { %s36_s25 = sshll.u32 %s4153_s24, 4  ;;  %s57_s27 = sshll.u32 %s4154_s26, 4  ;;  %s37_s25 = int_to_ptr.vmem [resolvable:$true] %s36_s25  ;;  %s4206_s27 = int_to_ptr.vmem [resolvable:$true] %s57_s27 }
   0x5   :  { %s4013_s30 = scalar_lea.hbm %s4365_s2, 32 }
   0x6   :  { %p4014_p0 = scmp.ne.s32.totalorder %s4365_s2, %s4013_s30  ;;  %p4017_p1 = scmp.lt.u32.totalorder %s4013_s30, %s4365_s2 }
   0x8   :  { %p4019_p2 = pnand %p4017_p1, %p4014_p0 }
   0xa   :  { %4022 = shalt.err (!%p4019_p2)
}
   0xb   :  { %s4023_s12 = scalar_lea.vmem %s37_s25, 32  ;;  %p4028_p4 = scmp.lt.s32.totalorder %s37_s25, %s37_s25 }
   0xc   :  { %p4024_p3 = scmp.ne.s32.totalorder %s37_s25, %s4023_s12  ;;  %p4029_p5 = scmp.lt.s32.totalorder %s4023_s12, %s4023_s12 }
   0xe   :  { %p4030_p6 = por %p4029_p5, %p4028_p4 }
  0x10   :  { %p4031_p7 = pnand %p4030_p6, %p4024_p3 }
  0x12   :  { %4034 = shalt.err (!%p4031_p7)
}
  0x13   :  { %39 = dma.hbm_to_vmem [thread:$0]  %s4365_s2, 32, %s37_s25, [#allocation5]  }
  0x14   :  { %s4035_s17 = scalar_lea.hbm %s4367_s4, 512 }
  0x15   :  { %p4036_p8 = scmp.ne.s32.totalorder %s4367_s4, %s4035_s17  ;;  %p4039_p9 = scmp.lt.u32.totalorder %s4035_s17, %s4367_s4 }
  0x17   :  { %p4041_p10 = pnand %p4039_p9, %p4036_p8 }
  0x19   :  { %4044 = shalt.err (!%p4041_p10)
}
  0x1a   :  { %s4045_s22 = scalar_lea.vmem %s4206_s27, 512  ;;  %p4050_p12 = scmp.lt.s32.totalorder %s4206_s27, %s4206_s27 }
  0x1b   :  { %p4046_p11 = scmp.ne.s32.totalorder %s4206_s27, %s4045_s22  ;;  %p4051_p13 = scmp.lt.s32.totalorder %s4045_s22, %s4045_s22 }
  0x1d   :  { %p4052_p0 = por %p4051_p13, %p4050_p12 }
  0x1f   :  { %p4053_p1 = pnand %p4052_p0, %p4046_p11 }
  0x21   :  { %4056 = shalt.err (!%p4053_p1)
}
  0x22   :  { %s4155_s2 = smov 256   ;;  %s4156_s23 = smov 16  }
  0x23   :  { %63 = dma.hbm_to_vmem [thread:$0]  %s4367_s4, 512, %s4206_s27, [#allocation8], %s4155_s2, %s4155_s2, %s4156_s23  }
  0x24   :  { %s4157_s26 = smov [#allocation2]   ;;  %s4057_s8 = scalar_lea.hbm %s4364_s1, 768 }
  0x25   :  { %s23_s28 = sshll.u32 %s4157_s26, 4  ;;  %p4058_p2 = scmp.ne.s32.totalorder %s4364_s1, %s4057_s8  ;;  %s24_s28 = int_to_ptr.vmem [resolvable:$true] %s23_s28 }
  0x26   :  { %p4061_p3 = scmp.lt.u32.totalorder %s4057_s8, %s4364_s1 }
  0x28   :  { %p4063_p4 = pnand %p4061_p3, %p4058_p2 }
  0x2a   :  { %4066 = shalt.err (!%p4063_p4)
}
  0x2b   :  { %s4067_s13 = scalar_lea.vmem %s24_s28, 768  ;;  %p4072_p6 = scmp.lt.s32.totalorder %s24_s28, %s24_s28 }
  0x2c   :  { %p4068_p5 = scmp.ne.s32.totalorder %s24_s28, %s4067_s13  ;;  %p4073_p7 = scmp.lt.s32.totalorder %s4067_s13, %s4067_s13 }
  0x2e   :  { %p4074_p8 = por %p4073_p7, %p4072_p6 }
  0x30   :  { %p4075_p9 = pnand %p4074_p8, %p4068_p5 }
  0x32   :  { %4078 = shalt.err (!%p4075_p9)
}
  0x33   :  { %s4158_s4 = smov 128   ;;  %s4159_s27 = smov 8  }
  0x34   :  { %29 = dma.hbm_to_vmem [thread:$0]  %s4364_s1, 768, %s24_s28, [#allocation3], %s4158_s4, %s4158_s4, %s4159_s27  }
  0x35   :  { %s4160_s16 = smov [#allocation6]   ;;  %s4161_s18 = smov [#allocation9]  }
  0x36   :  { %s45_s17 = sshll.u32 %s4160_s16, 4  ;;  %s69_s19 = sshll.u32 %s4161_s18, 4  ;;  %s46_s17 = int_to_ptr.vmem [resolvable:$true] %s45_s17  ;;  %s70_s19 = int_to_ptr.vmem [resolvable:$true] %s69_s19 }
  0x37   :  { %s4079_s22 = scalar_lea.hbm %s4366_s3, 40960 }
  0x38   :  { %p4080_p10 = scmp.ne.s32.totalorder %s4366_s3, %s4079_s22  ;;  %p4083_p11 = scmp.lt.u32.totalorder %s4079_s22, %s4366_s3 }
  0x3a   :  { %p4085_p12 = pnand %p4083_p11, %p4080_p10 }
  0x3c   :  { %4088 = shalt.err (!%p4085_p12)
}
  0x3d   :  { %s4089_s1 = scalar_lea.vmem %s46_s17, 40960  ;;  %p4094_p0 = scmp.lt.s32.totalorder %s46_s17, %s46_s17 }
  0x3e   :  { %p4090_p13 = scmp.ne.s32.totalorder %s46_s17, %s4089_s1  ;;  %p4095_p1 = scmp.lt.s32.totalorder %s4089_s1, %s4089_s1 }
  0x40   :  { %p4096_p2 = por %p4095_p1, %p4094_p0 }
  0x42   :  { %p4097_p3 = pnand %p4096_p2, %p4090_p13 }
  0x44   :  { %4100 = shalt.err (!%p4097_p3)
}
  0x45   :  { %51 = dma.hbm_to_vmem [thread:$0]  %s4366_s3, 40960, %s46_s17, [#allocation5], %s4158_s4, %s4158_s4, %s4159_s27  }
  0x46   :  { %s4101_s8 = scalar_lea.hbm %s4368_s5, 2048 }
  0x47   :  { %p4102_p4 = scmp.ne.s32.totalorder %s4368_s5, %s4101_s8  ;;  %p4105_p5 = scmp.lt.u32.totalorder %s4101_s8, %s4368_s5 }
  0x49   :  { %p4107_p6 = pnand %p4105_p5, %p4102_p4 }
  0x4b   :  { %4110 = shalt.err (!%p4107_p6)
}
  0x4c   :  { %s4111_s13 = scalar_lea.vmem %s70_s19, 2048  ;;  %p4116_p8 = scmp.lt.s32.totalorder %s70_s19, %s70_s19 }
  0x4d   :  { %p4112_p7 = scmp.ne.s32.totalorder %s70_s19, %s4111_s13  ;;  %p4117_p9 = scmp.lt.s32.totalorder %s4111_s13, %s4111_s13 }
  0x4f   :  { %p4118_p10 = por %p4117_p9, %p4116_p8 }
  0x51   :  { %p4119_p11 = pnand %p4118_p10, %p4112_p7 }
  0x53   :  { %4122 = shalt.err (!%p4119_p11)
}
  0x54   :  { %s4162_s3 = smov 64   ;;  %s4163_s4 = smov 4  }
  0x55   :  { %75 = dma.hbm_to_vmem [thread:$0]  %s4368_s5, 2048, %s70_s19, [#allocation8], %s4162_s3, %s4162_s3, %s4163_s4  }
  0x56   :  { %s4164_s15 = smov [#allocation10]   ;;  %s4123_s20 = scalar_lea.hbm %s4369_s6, 16 }
  0x57   :  { %s82_s16 = sshll.u32 %s4164_s15, 4  ;;  %p4124_p12 = scmp.ne.s32.totalorder %s4369_s6, %s4123_s20  ;;  %s83_s16 = int_to_ptr.vmem [resolvable:$true] %s82_s16 }
  0x58   :  { %p4127_p13 = scmp.lt.u32.totalorder %s4123_s20, %s4369_s6 }
  0x5a   :  { %p4129_p0 = pnand %p4127_p13, %p4124_p12 }
  0x5c   :  { %4132 = shalt.err (!%p4129_p0)
}
  0x5d   :  { %s4133_s24 = scalar_lea.vmem %s83_s16, 16  ;;  %s4137_s5 = scalar_lea.vmem %s83_s16, 32 }
  0x5e   :  { %p4134_p1 = scmp.ne.s32.totalorder %s83_s16, %s4133_s24  ;;  %p4138_p2 = scmp.lt.s32.totalorder %s83_s16, %s83_s16 }
  0x5f   :  { %p4139_p3 = scmp.lt.s32.totalorder %s4137_s5, %s4133_s24 }
  0x61   :  { %p4140_p4 = por %p4139_p3, %p4138_p2 }
  0x63   :  { %p4141_p5 = pnand %p4140_p4, %p4134_p1 }
  0x65   :  { %4144 = shalt.err (!%p4141_p5)
}
  0x66   :  { %85 = dma.hbm_to_vmem [thread:$0]  %s4369_s6, 16, %s83_s16, [#allocation11]  }
  0x67   :  { %4145 = dma.done.wait [#allocation3], 768  }
  0x68   :  { %4146 = vsyncadd [#allocation3], 4294966528 }
  0x69   :  { %4147 = dma.done.wait [#allocation5], 40992  }
  0x6a   :  { %4148 = vsyncadd [#allocation5], 4294926304 }
  0x6b   :  { %4149 = dma.done.wait [#allocation8], 2560  }
  0x6c   :  { %4150 = vsyncadd [#allocation8], 4294964736 }
  0x6d   :  { %4151 = dma.done.wait [#allocation11], 16  }
  0x6e   :  { %4152 = vsyncadd [#allocation11], 4294967280  ;;  %v4165_v0 = vmov 0   ;;  %v3507_v1 = vld [vmem:[#allocation2 + $0x4] ss:$8 sps:$4 sm:$0xff]   ;;  %vm150_vm0 = vcmask 1046528  }
  0x6f   :  { %189 = vmatprep.mubr.bf16.mxu0 %v4165_v0  ;;  %v3509_v2 = vld [vmem:[#allocation2] ss:$8 sps:$4 sm:$0xff]   ;;  %157 = vmatprep.subr.bf16.mxu0 %v3507_v1  ;;  %v3510_v3 = vld [vmem:[#allocation2 + $0x14] ss:$8 sps:$4 sm:$0xff]   ;;  %v3512_v4 = vld [vmem:[#allocation2 + $0x10] ss:$8 sps:$4 sm:$0xff]  }
  0x70   :  { %158 = vmatpush1.bf16.msra.mxu0 %v3509_v2  ;;  %v3513_v5 = vld [vmem:[#allocation2 + $0x24] ss:$8 sps:$4 sm:$0x7f]   ;;  %v3515_v6 = vld [vmem:[#allocation2 + $0x20] ss:$8 sps:$4 sm:$0x7f]  }
  0x71   :  { %159 = vmatprep.subr.bf16.mxu0 %v3510_v3  ;;  %v3517_v7 = vld [vmem:[#allocation6 + $0x4] ss:$8 sps:$4 sm:$0xff]   ;;  %v3519_v8 = vld [vmem:[#allocation6] ss:$8 sps:$4 sm:$0xff]   ;;  %v3520_v9 = vld [vmem:[#allocation6 + $0x14] ss:$8 sps:$4 sm:$0xff]  }
  0x72   :  { %424 = vmatprep.subr.bf16.mxu1 %v3517_v7  ;;  %v152_v10 = vsel %vm150_vm0, %v3515_v6, 0  ;;  %v3522_v11 = vld [vmem:[#allocation6 + $0x10] ss:$8 sps:$4 sm:$0xff]   ;;  %v3523_v12 = vld [vmem:[#allocation6 + $0x24] ss:$8 sps:$4 sm:$0xff]   ;;  %vm146_vm1 = vcmask 375808   ;;  %v204_v6 = vlaneseq }
  0x73   :  { %425 = vmatpush1.bf16.msra.mxu1 %v3519_v8  ;;  %v3516_v13 = vld [vmem:[%s4363_s0] sm:$0xff]   ;;  %v3525_v14 = vld [vmem:[#allocation6 + $0x20] ss:$8 sps:$4 sm:$0xff]  }
  0x74   :  { %160 = vmatpush1.bf16.msra.mxu0 %v3512_v4  ;;  %426 = vmatprep.subr.bf16.mxu1 %v3520_v9  ;;  %v3526_v15 = vld [vmem:[#allocation6 + $0x34] ss:$8 sps:$4 sm:$0xff]   ;;  %v3528_v16 = vld [vmem:[#allocation6 + $0x30] ss:$8 sps:$4 sm:$0xff]   ;;  %v3529_v17 = vld [vmem:[#allocation6 + $0x44] ss:$8 sps:$4 sm:$0xff]  }
  0x75   :  { %3133 = vmatprep.subr.msk.bf16.mxu0 %vm150_vm0, %v3513_v5  ;;  %v3531_v18 = vld [vmem:[#allocation6 + $0x40] ss:$8 sps:$4 sm:$0xff]   ;;  %v3532_v19 = vld [vmem:[#allocation6 + $0x54] ss:$8 sps:$4 sm:$0xff]   ;;  %v3534_v20 = vld [vmem:[#allocation6 + $0x50] ss:$8 sps:$4 sm:$0xff]  }
  0x76   :  { %v3535_v21 = vld [vmem:[#allocation6 + $0x64] ss:$8 sps:$4 sm:$0xff]   ;;  %v3537_v22 = vld [vmem:[#allocation6 + $0x60] ss:$8 sps:$4 sm:$0xff]   ;;  %v3538_v23 = vld [vmem:[#allocation6 + $0x74] ss:$8 sps:$4 sm:$0xff]  }
  0x77   :  { %427 = vmatpush1.bf16.msra.mxu1 %v3522_v11  ;;  %v3540_v24 = vld [vmem:[#allocation6 + $0x70] ss:$8 sps:$4 sm:$0xff]   ;;  %v3541_v25 = vld [vmem:[#allocation6 + $0x84] ss:$8 sps:$4 sm:$0xff]   ;;  %v3543_v26 = vld [vmem:[#allocation6 + $0x80] ss:$8 sps:$4 sm:$0xff]  }
  0x78   :  { %162 = vmatpush1.bf16.msra.mxu0 %v152_v10  ;;  %428 = vmatprep.subr.bf16.mxu1 %v3523_v12  ;;  %v3544_v27 = vld [vmem:[#allocation6 + $0x94] ss:$8 sps:$4 sm:$0xff]   ;;  %v3546_v28 = vld [vmem:[#allocation6 + $0x90] ss:$8 sps:$4 sm:$0xff]   ;;  %v3547_v29 = vld [vmem:[#allocation6 + $0xa4] ss:$8 sps:$4 sm:$0xff]  }
  0x79   :  { %v3549_v30 = vld [vmem:[#allocation6 + $0xa0] ss:$8 sps:$4 sm:$0xff]   ;;  %v3550_v31 = vld [vmem:[#allocation6 + $0xb4] ss:$8 sps:$4 sm:$0xff]   ;;  %v3552_v32 = vld [vmem:[#allocation6 + $0xb0] ss:$8 sps:$4 sm:$0xff]  }
  0x7a   :  { %v3553_v33 = vld [vmem:[#allocation6 + $0xc4] ss:$8 sps:$4 sm:$0xff]   ;;  %v3555_v34 = vld [vmem:[#allocation6 + $0xc0] ss:$8 sps:$4 sm:$0xff]   ;;  %v3556_v35 = vld [vmem:[#allocation6 + $0xd4] ss:$8 sps:$4 sm:$0xff]  }
  0x7b   :  { %3134 = vmatmul.mubr.msk.bf16.vlgmr.msra.gmra.mrb[0].mxu0 %vm146_vm1, %v3516_v13  ;;  %429 = vmatpush1.bf16.msra.mxu1 %v3525_v14  ;;  %v3558_v36 = vld [vmem:[#allocation6 + $0xd0] ss:$8 sps:$4 sm:$0xff]   ;;  %v3559_v37 = vld [vmem:[#allocation6 + $0xe4] ss:$8 sps:$4 sm:$0xff]   ;;  %v3561_v38 = vld [vmem:[#allocation6 + $0xe0] ss:$8 sps:$4 sm:$0xff]  }
  0x7c   :  { %430 = vmatprep.subr.bf16.mxu1 %v3526_v15  ;;  %v3562_v39 = vld [vmem:[#allocation6 + $0xf4] ss:$8 sps:$4 sm:$0xff]   ;;  %v3564_v40 = vld [vmem:[#allocation6 + $0xf0] ss:$8 sps:$4 sm:$0xff]   ;;  %v3565_v41 = vld [vmem:[#allocation6 + $0x100] ss:$8 sps:$4 sm:$0xff]  }
  0x7d   :  { %v3567_v42 = vld [vmem:[#allocation6 + $0x104] ss:$8 sps:$4 sm:$0xff]   ;;  %v3570_v43 = vld [vmem:[#allocation6 + $0x114] ss:$8 sps:$4 sm:$0xff]   ;;  %v3568_v44 = vld [vmem:[#allocation6 + $0x110] ss:$8 sps:$4 sm:$0xff]  }
  0x7e   :  { %694 = vmatprep.subr.bf16.mxu0 %v3567_v42  ;;  %v3573_v45 = vld [vmem:[#allocation6 + $0x124] ss:$8 sps:$4 sm:$0xff]   ;;  %v3571_v46 = vld [vmem:[#allocation6 + $0x120] ss:$8 sps:$4 sm:$0xff]   ;;  %v3576_v47 = vld [vmem:[#allocation6 + $0x134] ss:$8 sps:$4 sm:$0xff]  }
  0x7f   :  { %431 = vmatpush1.bf16.msra.mxu1 %v3528_v16  ;;  %695 = vmatpush1.bf16.msra.mxu0 %v3565_v41  ;;  %v3574_v48 = vld [vmem:[#allocation6 + $0x130] ss:$8 sps:$4 sm:$0xff]   ;;  %v3579_v49 = vld [vmem:[#allocation6 + $0x144] ss:$8 sps:$4 sm:$0xff]   ;;  %v3577_v50 = vld [vmem:[#allocation6 + $0x140] ss:$8 sps:$4 sm:$0xff]  }
  0x80   :  { %432 = vmatprep.subr.bf16.mxu1 %v3529_v17  ;;  %696 = vmatprep.subr.bf16.mxu0 %v3570_v43  ;;  %v3582_v51 = vld [vmem:[#allocation6 + $0x154] ss:$8 sps:$4 sm:$0xff]   ;;  %v3580_v52 = vld [vmem:[#allocation6 + $0x150] ss:$8 sps:$4 sm:$0xff]   ;;  %v3585_v53 = vld [vmem:[#allocation6 + $0x164] ss:$8 sps:$4 sm:$0xff]  }
  0x81   :  { %v3583_v54 = vld [vmem:[#allocation6 + $0x160] ss:$8 sps:$4 sm:$0xff]   ;;  %v3588_v55 = vld [vmem:[#allocation6 + $0x174] ss:$8 sps:$4 sm:$0xff]   ;;  %v3586_v56 = vld [vmem:[#allocation6 + $0x170] ss:$8 sps:$4 sm:$0xff]  }
  0x82   :  { %v3591_v57 = vld [vmem:[#allocation6 + $0x184] ss:$8 sps:$4 sm:$0xff]   ;;  %v3589_v58 = vld [vmem:[#allocation6 + $0x180] ss:$8 sps:$4 sm:$0xff]   ;;  %v3594_v59 = vld [vmem:[#allocation6 + $0x194] ss:$8 sps:$4 sm:$0xff]  }
  0x83   :  { %433 = vmatpush1.bf16.msra.mxu1 %v3531_v18  ;;  %697 = vmatpush1.bf16.msra.mxu0 %v3568_v44  ;;  %v3592_v60 = vld [vmem:[#allocation6 + $0x190] ss:$8 sps:$4 sm:$0xff]   ;;  %v3597_v61 = vld [vmem:[#allocation6 + $0x1a4] ss:$8 sps:$4 sm:$0xff]   ;;  %v3595_v62 = vld [vmem:[#allocation6 + $0x1a0] ss:$8 sps:$4 sm:$0xff]  }
  0x84   :  { %434 = vmatprep.subr.bf16.mxu1 %v3532_v19  ;;  %698 = vmatprep.subr.bf16.mxu0 %v3573_v45  ;;  %v3600_v63 = vld [vmem:[#allocation6 + $0x1b4] ss:$8 sps:$4 sm:$0xff]   ;;  %v3598_v1 = vld [vmem:[#allocation6 + $0x1b0] ss:$8 sps:$4 sm:$0xff]   ;;  %v3603_v2 = vld [vmem:[#allocation6 + $0x1c4] ss:$8 sps:$4 sm:$0xff]  }
  0x85   :  { %v3601_v3 = vld [vmem:[#allocation6 + $0x1c0] ss:$8 sps:$4 sm:$0xff]   ;;  %v3606_v4 = vld [vmem:[#allocation6 + $0x1d4] ss:$8 sps:$4 sm:$0xff]   ;;  %v3604_v5 = vld [vmem:[#allocation6 + $0x1d0] ss:$8 sps:$4 sm:$0xff]  }
  0x86   :  { %v205_v7 = vshrl.u32 %v204_v6, 7  ;;  %v202_v9 = vld [vmem:[#allocation4] sm:$0x3]  ;;  %v3628_v42 = vld [vmem:[#allocation6 + $0x250] ss:$8 sps:$4 sm:$0xff]  }
  0x87   :  { %435 = vmatpush1.bf16.msra.mxu1 %v3534_v20  ;;  %699 = vmatpush1.bf16.msra.mxu0 %v3571_v46  ;;  %v3630_v41 = vld [vmem:[#allocation6 + $0x254] ss:$8 sps:$4 sm:$0xff]   ;;  %v3633_v43 = vld [vmem:[#allocation6 + $0x264] ss:$8 sps:$4 sm:$0xff]   ;;  %v3631_v44 = vld [vmem:[#allocation6 + $0x260] ss:$8 sps:$4 sm:$0xff]  }
  0x88   :  { %436 = vmatprep.subr.bf16.mxu1 %v3535_v21  ;;  %700 = vmatprep.subr.bf16.mxu0 %v3576_v47  ;;  %v4289_v8 = vsub.s32 1, %v205_v7  ;;  %v4291_v10 = vsub.s32 0, %v205_v7  ;;  %v3636_v45 = vld [vmem:[#allocation6 + $0x274] ss:$8 sps:$4 sm:$0xff]   ;;  %v3634_v46 = vld [vmem:[#allocation6 + $0x270] ss:$8 sps:$4 sm:$0xff]  }
  0x89   :  { %v3639_v47 = vld [vmem:[#allocation6 + $0x284] ss:$8 sps:$4 sm:$0xff]  }
  0x8a   :  { %v211_v11 = vrot.slane %v202_v9, %v4289_v8  ;;  %v207_v12 = vrot.slane %v202_v9, %v4291_v10 }
  0x8b   :  { %437 = vmatpush1.bf16.msra.mxu1 %v3537_v22  ;;  %701 = vmatpush1.bf16.msra.mxu0 %v3574_v48  ;;  %v3637_v48 = vld [vmem:[#allocation6 + $0x280] ss:$8 sps:$4 sm:$0xff]  }
  0x8c   :  { %438 = vmatprep.subr.bf16.mxu1 %v3538_v23  ;;  %702 = vmatprep.subr.bf16.mxu0 %v3579_v49  ;;  %v215_v13 = vpack.c.bf16 %v211_v11, %v211_v11  ;;  %v214_v14 = vpack.c.bf16 %v207_v12, %v207_v12  ;;  %v3642_v49 = vld [vmem:[#allocation6 + $0x294] ss:$8 sps:$4 sm:$0xff]  }
  0x8e   :  { %v224_v15 = vpack.i.b16 %v215_v13, %v215_v13  ;;  %v217_v16 = vpack.i.b16 %v214_v14, %v214_v14 }
  0x8f   :  { %439 = vmatpush1.bf16.msra.mxu1 %v3540_v24  ;;  %703 = vmatpush1.bf16.msra.mxu0 %v3577_v50  ;;  %v3640_v50 = vld [vmem:[#allocation6 + $0x290] ss:$8 sps:$4 sm:$0xff]  }
  0x90   :  { %440 = vmatprep.subr.bf16.mxu1 %v3541_v25  ;;  %704 = vmatprep.subr.bf16.mxu0 %v3582_v51  ;;  %v229_v20 = vrot.slane %v224_v15, %v4291_v10  ;;  %v222_v22 = vrot.slane %v217_v16, %v4291_v10  ;;  %v3645_v51 = vld [vmem:[#allocation6 + $0x2a4] ss:$8 sps:$4 sm:$0xff]  }
  0x93   :  { %441 = vmatpush1.bf16.msra.mxu1 %v3543_v26  ;;  %705 = vmatpush1.bf16.msra.mxu0 %v3580_v52  ;;  %v3643_v52 = vld [vmem:[#allocation6 + $0x2a0] ss:$8 sps:$4 sm:$0xff]  }
  0x94   :  { %442 = vmatprep.subr.bf16.mxu1 %v3544_v27  ;;  %706 = vmatprep.subr.bf16.mxu0 %v3585_v53  ;;  %v3609_v27 = vld [vmem:[#allocation6 + $0x1e4] ss:$8 sps:$4 sm:$0xff]   ;;  %v3648_v53 = vld [vmem:[#allocation6 + $0x2b4] ss:$8 sps:$4 sm:$0xff]  }
  0x97   :  { %443 = vmatpush1.bf16.msra.mxu1 %v3546_v28  ;;  %707 = vmatpush1.bf16.msra.mxu0 %v3583_v54  ;;  %v3607_v28 = vld [vmem:[#allocation6 + $0x1e0] ss:$8 sps:$4 sm:$0xff]   ;;  %v3646_v54 = vld [vmem:[#allocation6 + $0x2b0] ss:$8 sps:$4 sm:$0xff]  }
  0x98   :  { %444 = vmatprep.subr.bf16.mxu1 %v3547_v29  ;;  %708 = vmatprep.subr.bf16.mxu0 %v3588_v55  ;;  %v3612_v29 = vld [vmem:[#allocation6 + $0x1f4] ss:$8 sps:$4 sm:$0xff]   ;;  %v3651_v55 = vld [vmem:[#allocation6 + $0x2c4] ss:$8 sps:$4 sm:$0xff]  }
  0x9b   :  { %445 = vmatpush1.bf16.msra.mxu1 %v3549_v30  ;;  %709 = vmatpush1.bf16.msra.mxu0 %v3586_v56  ;;  %v3610_v30 = vld [vmem:[#allocation6 + $0x1f0] ss:$8 sps:$4 sm:$0xff]   ;;  %v3649_v56 = vld [vmem:[#allocation6 + $0x2c0] ss:$8 sps:$4 sm:$0xff]  }
  0x9c   :  { %446 = vmatprep.subr.bf16.mxu1 %v3550_v31  ;;  %710 = vmatprep.subr.bf16.mxu0 %v3591_v57  ;;  %v3613_v31 = vld [vmem:[#allocation6 + $0x200] ss:$8 sps:$4 sm:$0xff]   ;;  %v3654_v57 = vld [vmem:[#allocation6 + $0x2d4] ss:$8 sps:$4 sm:$0xff]  }
  0x9f   :  { %447 = vmatpush1.bf16.msra.mxu1 %v3552_v32  ;;  %711 = vmatpush1.bf16.msra.mxu0 %v3589_v58  ;;  %v3615_v32 = vld [vmem:[#allocation6 + $0x204] ss:$8 sps:$4 sm:$0xff]   ;;  %v3652_v58 = vld [vmem:[#allocation6 + $0x2d0] ss:$8 sps:$4 sm:$0xff]  }
  0xa0   :  { %448 = vmatprep.subr.bf16.mxu1 %v3553_v33  ;;  %712 = vmatprep.subr.bf16.mxu0 %v3594_v59  ;;  %v3618_v33 = vld [vmem:[#allocation6 + $0x214] ss:$8 sps:$4 sm:$0xff]   ;;  %v467_v59 = vld [vmem:[#allocation7] ss:$8 sm:$0x3] }
  0xa3   :  { %449 = vmatpush1.bf16.msra.mxu1 %v3555_v34  ;;  %713 = vmatpush1.bf16.msra.mxu0 %v3592_v60  ;;  %v3616_v34 = vld [vmem:[#allocation6 + $0x210] ss:$8 sps:$4 sm:$0xff]   ;;  %v474_v60 = vrot.slane %v467_v59, %v4291_v10 }
  0xa4   :  { %450 = vmatprep.subr.bf16.mxu1 %v3556_v35  ;;  %714 = vmatprep.subr.bf16.mxu0 %v3597_v61  ;;  %v3621_v35 = vld [vmem:[#allocation6 + $0x224] ss:$8 sps:$4 sm:$0xff]   ;;  %v478_v61 = vrot.slane %v467_v59, %v4289_v8 }
  0xa7   :  { %451 = vmatpush1.bf16.msra.mxu1 %v3558_v36  ;;  %715 = vmatpush1.bf16.msra.mxu0 %v3595_v62  ;;  %v3619_v36 = vld [vmem:[#allocation6 + $0x220] ss:$8 sps:$4 sm:$0xff]   ;;  %v481_v62 = vpack.c.bf16 %v474_v60, %v474_v60 }
  0xa8   :  { %452 = vmatprep.subr.bf16.mxu1 %v3559_v37  ;;  %716 = vmatprep.subr.bf16.mxu0 %v3600_v63  ;;  %v3624_v37 = vld [vmem:[#allocation6 + $0x234] ss:$8 sps:$4 sm:$0xff]   ;;  %v482_v63 = vpack.c.bf16 %v478_v61, %v478_v61 }
  0xab   :  { %453 = vmatpush1.bf16.msra.mxu1 %v3561_v38  ;;  %717 = vmatpush1.bf16.msra.mxu0 %v3598_v1  ;;  %v3622_v38 = vld [vmem:[#allocation6 + $0x230] ss:$8 sps:$4 sm:$0xff]   ;;  %v484_v1 = vpack.i.b16 %v481_v62, %v481_v62 }
  0xac   :  { %454 = vmatprep.subr.bf16.mxu1 %v3562_v39  ;;  %718 = vmatprep.subr.bf16.mxu0 %v3603_v2  ;;  %v3627_v39 = vld [vmem:[#allocation6 + $0x244] ss:$8 sps:$4 sm:$0xff]   ;;  %v491_v2 = vpack.i.b16 %v482_v63, %v482_v63 }
  0xae   :  { %v496_v7 = vrot.slane %v491_v2, %v4291_v10 }
  0xaf   :  { %455 = vmatpush1.bf16.msra.mxu1 %v3564_v40  ;;  %719 = vmatpush1.bf16.msra.mxu0 %v3601_v3  ;;  %v3625_v40 = vld [vmem:[#allocation6 + $0x240] ss:$8 sps:$4 sm:$0xff]  }
  0xb0   :  { %720 = vmatprep.subr.bf16.mxu0 %v3606_v4  ;;  %965 = vmatprep.subr.bf16.mxu1 %v3615_v32  ;;  %v3676_v32 = vld [vmem:[#allocation6 + $0x350] ss:$8 sps:$4 sm:$0xff]  }
  0xb3   :  { %721 = vmatpush1.bf16.msra.mxu0 %v3604_v5  ;;  %v489_v5 = vrot.slane %v484_v1, %v4291_v10 }
  0xb4   :  { %722 = vmatprep.subr.bf16.mxu0 %v3609_v27  ;;  %v3672_v27 = vld [vmem:[#allocation6 + $0x334] ss:$8 sps:$4 sm:$0xff]  }
  0xb7   :  { %723 = vmatpush1.bf16.msra.mxu0 %v3607_v28  ;;  %v3670_v28 = vld [vmem:[#allocation6 + $0x330] ss:$8 sps:$4 sm:$0xff]  }
  0xb8   :  { %724 = vmatprep.subr.bf16.mxu0 %v3612_v29  ;;  %v3675_v29 = vld [vmem:[#allocation6 + $0x344] ss:$8 sps:$4 sm:$0xff]  }
  0xbb   :  { %725 = vmatpush1.bf16.msra.mxu0 %v3610_v30  ;;  %v3673_v30 = vld [vmem:[#allocation6 + $0x340] ss:$8 sps:$4 sm:$0xff]  }
 0x14e   :  { %v191_v17 = vpop.f32.mrb[0].mxu0 }
 0x14f   :  { %v193_v18 = vpop.f32.mrb[1].mxu0 }
 0x150   :  { %v195_v19 = vpop.f32.mrb[2].mxu0 }
 0x151   :  { %v200_v21 = vpack.c.bf16 %v195_v19, %v191_v17  ;;  %v197_v23 = vpop.f32.mrb[3].mxu0  ;;  %v3657_v17 = vld [vmem:[#allocation6 + $0x2e4] ss:$8 sps:$4 sm:$0xff]   ;;  %v3660_v19 = vld [vmem:[#allocation6 + $0x2f4] ss:$8 sps:$4 sm:$0xff]  }
 0x152   :  { %v201_v24 = vpack.c.bf16 %v197_v23, %v193_v18  ;;  %v3655_v18 = vld [vmem:[#allocation6 + $0x2e0] ss:$8 sps:$4 sm:$0xff]   ;;  %v3666_v23 = vld [vmem:[#allocation6 + $0x314] ss:$8 sps:$4 sm:$0xff]  }
 0x153   :  { %v230_v26 = vadd.bf16 %v222_v22, %v200_v21  ;;  %v3661_v21 = vld [vmem:[#allocation6 + $0x300] ss:$8 sps:$4 sm:$0xff]   ;;  %v3663_v22 = vld [vmem:[#allocation6 + $0x304] ss:$8 sps:$4 sm:$0xff]  }
 0x154   :  { %v231_v25 = vadd.bf16 %v229_v20, %v201_v24  ;;  %v3658_v20 = vld [vmem:[#allocation6 + $0x2f0] ss:$8 sps:$4 sm:$0xff]   ;;  %1236 = vmatprep.subr.bf16.mxu0 %v3663_v22 }
 0x155   :  { %v3664_v24 = vld [vmem:[#allocation6 + $0x310] ss:$8 sps:$4 sm:$0xff]  }
 0x156   :  { %456 = vmatprep.mubr.bf16.mxu1 %v231_v25  ;;  %v3669_v25 = vld [vmem:[#allocation6 + $0x324] ss:$8 sps:$4 sm:$0xff]   ;;  %v3724_v22 = vld [vmem:[#allocation6 + $0x450] ss:$8 sps:$4 sm:$0xff]  }
 0x157   :  { %457 = vmatmul.mubr.bf16.vlgmr.msra.gmra.mrb[0].mxu1 %v230_v26  ;;  %v3667_v26 = vld [vmem:[#allocation6 + $0x320] ss:$8 sps:$4 sm:$0xff]  }
 0x158   :  { %966 = vmatpush1.bf16.msra.mxu1 %v3613_v31  ;;  %v3678_v31 = vld [vmem:[#allocation6 + $0x354] ss:$8 sps:$4 sm:$0xff]  }
 0x159   :  { %967 = vmatprep.subr.bf16.mxu1 %v3618_v33  ;;  %v3681_v33 = vld [vmem:[#allocation6 + $0x364] ss:$8 sps:$4 sm:$0xff]  }
 0x15c   :  { %968 = vmatpush1.bf16.msra.mxu1 %v3616_v34  ;;  %v3679_v34 = vld [vmem:[#allocation6 + $0x360] ss:$8 sps:$4 sm:$0xff]  }
 0x15d   :  { %969 = vmatprep.subr.bf16.mxu1 %v3621_v35  ;;  %v3684_v35 = vld [vmem:[#allocation6 + $0x374] ss:$8 sps:$4 sm:$0xff]  }
 0x160   :  { %970 = vmatpush1.bf16.msra.mxu1 %v3619_v36  ;;  %v3682_v36 = vld [vmem:[#allocation6 + $0x370] ss:$8 sps:$4 sm:$0xff]  }
 0x161   :  { %971 = vmatprep.subr.bf16.mxu1 %v3624_v37  ;;  %v3687_v37 = vld [vmem:[#allocation6 + $0x384] ss:$8 sps:$4 sm:$0xff]  }
 0x164   :  { %972 = vmatpush1.bf16.msra.mxu1 %v3622_v38  ;;  %v3685_v38 = vld [vmem:[#allocation6 + $0x380] ss:$8 sps:$4 sm:$0xff]  }
 0x165   :  { %973 = vmatprep.subr.bf16.mxu1 %v3627_v39  ;;  %v3690_v39 = vld [vmem:[#allocation6 + $0x394] ss:$8 sps:$4 sm:$0xff]  }
 0x168   :  { %974 = vmatpush1.bf16.msra.mxu1 %v3625_v40  ;;  %v3688_v40 = vld [vmem:[#allocation6 + $0x390] ss:$8 sps:$4 sm:$0xff]  }
 0x169   :  { %975 = vmatprep.subr.bf16.mxu1 %v3630_v41  ;;  %v3693_v41 = vld [vmem:[#allocation6 + $0x3a4] ss:$8 sps:$4 sm:$0xff]  }
 0x16c   :  { %976 = vmatpush1.bf16.msra.mxu1 %v3628_v42  ;;  %v3691_v42 = vld [vmem:[#allocation6 + $0x3a0] ss:$8 sps:$4 sm:$0xff]  }
 0x16d   :  { %977 = vmatprep.subr.bf16.mxu1 %v3633_v43  ;;  %v3696_v43 = vld [vmem:[#allocation6 + $0x3b4] ss:$8 sps:$4 sm:$0xff]  }
 0x170   :  { %978 = vmatpush1.bf16.msra.mxu1 %v3631_v44  ;;  %v3694_v44 = vld [vmem:[#allocation6 + $0x3b0] ss:$8 sps:$4 sm:$0xff]  }
 0x171   :  { %979 = vmatprep.subr.bf16.mxu1 %v3636_v45  ;;  %v3699_v45 = vld [vmem:[#allocation6 + $0x3c4] ss:$8 sps:$4 sm:$0xff]  }
 0x174   :  { %980 = vmatpush1.bf16.msra.mxu1 %v3634_v46  ;;  %v3697_v46 = vld [vmem:[#allocation6 + $0x3c0] ss:$8 sps:$4 sm:$0xff]  }
 0x175   :  { %981 = vmatprep.subr.bf16.mxu1 %v3639_v47  ;;  %v3702_v47 = vld [vmem:[#allocation6 + $0x3d4] ss:$8 sps:$4 sm:$0xff]  }
 0x178   :  { %982 = vmatpush1.bf16.msra.mxu1 %v3637_v48  ;;  %v3700_v48 = vld [vmem:[#allocation6 + $0x3d0] ss:$8 sps:$4 sm:$0xff]  }
 0x179   :  { %983 = vmatprep.subr.bf16.mxu1 %v3642_v49  ;;  %v738_v49 = vld [vmem:[#allocation7 + $0x1] ss:$8 sm:$0x3] }
 0x17c   :  { %984 = vmatpush1.bf16.msra.mxu1 %v3640_v50  ;;  %v745_v50 = vrot.slane %v738_v49, %v4291_v10 }
 0x17d   :  { %985 = vmatprep.subr.bf16.mxu1 %v3645_v51  ;;  %v749_v51 = vrot.slane %v738_v49, %v4289_v8 }
 0x180   :  { %986 = vmatpush1.bf16.msra.mxu1 %v3643_v52  ;;  %v752_v52 = vpack.c.bf16 %v745_v50, %v745_v50 }
 0x181   :  { %987 = vmatprep.subr.bf16.mxu1 %v3648_v53  ;;  %v753_v53 = vpack.c.bf16 %v749_v51, %v749_v51 }
 0x184   :  { %988 = vmatpush1.bf16.msra.mxu1 %v3646_v54  ;;  %v755_v54 = vpack.i.b16 %v752_v52, %v752_v52 }
 0x185   :  { %989 = vmatprep.subr.bf16.mxu1 %v3651_v55  ;;  %v762_v55 = vpack.i.b16 %v753_v53, %v753_v53 }
 0x187   :  { %v767_v60 = vrot.slane %v762_v55, %v4291_v10 }
 0x188   :  { %990 = vmatpush1.bf16.msra.mxu1 %v3649_v56 }
 0x189   :  { %991 = vmatprep.subr.bf16.mxu1 %v3654_v57 }
 0x18c   :  { %992 = vmatpush1.bf16.msra.mxu1 %v3652_v58  ;;  %v760_v58 = vrot.slane %v755_v54, %v4291_v10 }
 0x18d   :  { %993 = vmatprep.subr.bf16.mxu1 %v3657_v17  ;;  %v3720_v17 = vld [vmem:[#allocation6 + $0x434] ss:$8 sps:$4 sm:$0xff]  }
 0x190   :  { %994 = vmatpush1.bf16.msra.mxu1 %v3655_v18  ;;  %v3718_v18 = vld [vmem:[#allocation6 + $0x430] ss:$8 sps:$4 sm:$0xff]  }
 0x191   :  { %995 = vmatprep.subr.bf16.mxu1 %v3660_v19  ;;  %v3723_v19 = vld [vmem:[#allocation6 + $0x444] ss:$8 sps:$4 sm:$0xff]  }
 0x194   :  { %996 = vmatpush1.bf16.msra.mxu1 %v3658_v20  ;;  %v3721_v20 = vld [vmem:[#allocation6 + $0x440] ss:$8 sps:$4 sm:$0xff]  }
 0x22a   :  { %v458_v3 = vpop.f32.mrb[0].mxu1 }
 0x22b   :  { %v460_v4 = vpop.f32.mrb[1].mxu1 }
 0x22c   :  { %v462_v6 = vpop.f32.mrb[2].mxu1 }
 0x22d   :  { %v468_v9 = vpack.c.bf16 %v462_v6, %v458_v3  ;;  %v464_v11 = vpop.f32.mrb[3].mxu1  ;;  %v3703_v6 = vld [vmem:[#allocation6 + $0x3e0] ss:$8 sps:$4 sm:$0xff]  }
 0x22e   :  { %v469_v12 = vpack.c.bf16 %v464_v11, %v460_v4  ;;  %v3709_v11 = vld [vmem:[#allocation6 + $0x400] ss:$8 sps:$4 sm:$0xff]  }
 0x22f   :  { %v497_v13 = vadd.bf16 %v489_v5, %v468_v9  ;;  %v3705_v5 = vld [vmem:[#allocation6 + $0x3e4] ss:$8 sps:$4 sm:$0xff]   ;;  %v3706_v9 = vld [vmem:[#allocation6 + $0x3f0] ss:$8 sps:$4 sm:$0xff]  }
 0x230   :  { %v498_v14 = vadd.bf16 %v496_v7, %v469_v12  ;;  %v3708_v7 = vld [vmem:[#allocation6 + $0x3f4] ss:$8 sps:$4 sm:$0xff]   ;;  %v3711_v12 = vld [vmem:[#allocation6 + $0x404] ss:$8 sps:$4 sm:$0xff]  }
 0x231   :  { %v499_v16 = vmax.bf16 %v4165_v0, %v497_v13  ;;  %v3714_v13 = vld [vmem:[#allocation6 + $0x414] ss:$8 sps:$4 sm:$0xff]   ;;  %1507 = vmatprep.subr.bf16.mxu1 %v3711_v12  ;;  %v3772_v12 = vld [vmem:[#allocation6 + $0x550] ss:$8 sps:$4 sm:$0xff]  }
 0x232   :  { %v500_v15 = vmax.bf16 %v4165_v0, %v498_v14  ;;  %v3712_v14 = vld [vmem:[#allocation6 + $0x410] ss:$8 sps:$4 sm:$0xff]  }
 0x234   :  { %726 = vmatprep.mubr.bf16.mxu0 %v500_v15  ;;  %v3717_v15 = vld [vmem:[#allocation6 + $0x424] ss:$8 sps:$4 sm:$0xff]  }
 0x235   :  { %727 = vmatmul.mubr.bf16.vlgmr.msra.gmra.mrb[4].mxu0 %v499_v16  ;;  %v3715_v16 = vld [vmem:[#allocation6 + $0x420] ss:$8 sps:$4 sm:$0xff]  }
 0x236   :  { %1237 = vmatpush1.bf16.msra.mxu0 %v3661_v21  ;;  %v3726_v21 = vld [vmem:[#allocation6 + $0x454] ss:$8 sps:$4 sm:$0xff]  }
 0x237   :  { %1238 = vmatprep.subr.bf16.mxu0 %v3666_v23  ;;  %v3729_v23 = vld [vmem:[#allocation6 + $0x464] ss:$8 sps:$4 sm:$0xff]  }
 0x23a   :  { %1239 = vmatpush1.bf16.msra.mxu0 %v3664_v24  ;;  %v3727_v24 = vld [vmem:[#allocation6 + $0x460] ss:$8 sps:$4 sm:$0xff]  }
 0x23b   :  { %1240 = vmatprep.subr.bf16.mxu0 %v3669_v25  ;;  %v3732_v25 = vld [vmem:[#allocation6 + $0x474] ss:$8 sps:$4 sm:$0xff]  }
 0x23e   :  { %1241 = vmatpush1.bf16.msra.mxu0 %v3667_v26  ;;  %v3730_v26 = vld [vmem:[#allocation6 + $0x470] ss:$8 sps:$4 sm:$0xff]  }
 0x23f   :  { %1242 = vmatprep.subr.bf16.mxu0 %v3672_v27  ;;  %v3735_v27 = vld [vmem:[#allocation6 + $0x484] ss:$8 sps:$4 sm:$0xff]  }
 0x242   :  { %1243 = vmatpush1.bf16.msra.mxu0 %v3670_v28  ;;  %v3733_v28 = vld [vmem:[#allocation6 + $0x480] ss:$8 sps:$4 sm:$0xff]  }
 0x243   :  { %1244 = vmatprep.subr.bf16.mxu0 %v3675_v29  ;;  %v3738_v29 = vld [vmem:[#allocation6 + $0x494] ss:$8 sps:$4 sm:$0xff]  }
 0x246   :  { %1245 = vmatpush1.bf16.msra.mxu0 %v3673_v30  ;;  %v3736_v30 = vld [vmem:[#allocation6 + $0x490] ss:$8 sps:$4 sm:$0xff]  }
 0x247   :  { %1246 = vmatprep.subr.bf16.mxu0 %v3678_v31  ;;  %v3741_v31 = vld [vmem:[#allocation6 + $0x4a4] ss:$8 sps:$4 sm:$0xff]  }
 0x24a   :  { %1247 = vmatpush1.bf16.msra.mxu0 %v3676_v32  ;;  %v3739_v32 = vld [vmem:[#allocation6 + $0x4a0] ss:$8 sps:$4 sm:$0xff]  }
 0x24b   :  { %1248 = vmatprep.subr.bf16.mxu0 %v3681_v33  ;;  %v3744_v33 = vld [vmem:[#allocation6 + $0x4b4] ss:$8 sps:$4 sm:$0xff]  }
 0x24e   :  { %1249 = vmatpush1.bf16.msra.mxu0 %v3679_v34  ;;  %v3742_v34 = vld [vmem:[#allocation6 + $0x4b0] ss:$8 sps:$4 sm:$0xff]  }
 0x24f   :  { %1250 = vmatprep.subr.bf16.mxu0 %v3684_v35  ;;  %v3747_v35 = vld [vmem:[#allocation6 + $0x4c4] ss:$8 sps:$4 sm:$0xff]  }
 0x252   :  { %1251 = vmatpush1.bf16.msra.mxu0 %v3682_v36  ;;  %v3745_v36 = vld [vmem:[#allocation6 + $0x4c0] ss:$8 sps:$4 sm:$0xff]  }
 0x253   :  { %1252 = vmatprep.subr.bf16.mxu0 %v3687_v37  ;;  %v3750_v37 = vld [vmem:[#allocation6 + $0x4d4] ss:$8 sps:$4 sm:$0xff]  }
 0x256   :  { %1253 = vmatpush1.bf16.msra.mxu0 %v3685_v38  ;;  %v3748_v38 = vld [vmem:[#allocation6 + $0x4d0] ss:$8 sps:$4 sm:$0xff]  }
 0x257   :  { %1254 = vmatprep.subr.bf16.mxu0 %v3690_v39  ;;  %v1009_v39 = vld [vmem:[#allocation7 + $0x2] ss:$8 sm:$0x3] }
 0x25a   :  { %1255 = vmatpush1.bf16.msra.mxu0 %v3688_v40  ;;  %v1016_v40 = vrot.slane %v1009_v39, %v4291_v10 }
 0x25b   :  { %1256 = vmatprep.subr.bf16.mxu0 %v3693_v41  ;;  %v1020_v41 = vrot.slane %v1009_v39, %v4289_v8 }
 0x25e   :  { %1257 = vmatpush1.bf16.msra.mxu0 %v3691_v42  ;;  %v1023_v42 = vpack.c.bf16 %v1016_v40, %v1016_v40 }
 0x25f   :  { %1258 = vmatprep.subr.bf16.mxu0 %v3696_v43  ;;  %v1024_v43 = vpack.c.bf16 %v1020_v41, %v1020_v41 }
 0x262   :  { %1259 = vmatpush1.bf16.msra.mxu0 %v3694_v44  ;;  %v1026_v44 = vpack.i.b16 %v1023_v42, %v1023_v42 }
 0x263   :  { %1260 = vmatprep.subr.bf16.mxu0 %v3699_v45  ;;  %v1033_v45 = vpack.i.b16 %v1024_v43, %v1024_v43 }
 0x265   :  { %v1038_v50 = vrot.slane %v1033_v45, %v4291_v10 }
 0x266   :  { %1261 = vmatpush1.bf16.msra.mxu0 %v3697_v46 }
 0x267   :  { %1262 = vmatprep.subr.bf16.mxu0 %v3702_v47 }
 0x26a   :  { %1263 = vmatpush1.bf16.msra.mxu0 %v3700_v48  ;;  %v1031_v48 = vrot.slane %v1026_v44, %v4291_v10 }
 0x26b   :  { %1264 = vmatprep.subr.bf16.mxu0 %v3705_v5  ;;  %v3768_v5 = vld [vmem:[#allocation6 + $0x534] ss:$8 sps:$4 sm:$0xff]  }
 0x26e   :  { %1265 = vmatpush1.bf16.msra.mxu0 %v3703_v6  ;;  %v3766_v6 = vld [vmem:[#allocation6 + $0x530] ss:$8 sps:$4 sm:$0xff]  }
 0x26f   :  { %1266 = vmatprep.subr.bf16.mxu0 %v3708_v7  ;;  %v3771_v7 = vld [vmem:[#allocation6 + $0x544] ss:$8 sps:$4 sm:$0xff]  }
 0x272   :  { %1267 = vmatpush1.bf16.msra.mxu0 %v3706_v9  ;;  %v3769_v9 = vld [vmem:[#allocation6 + $0x540] ss:$8 sps:$4 sm:$0xff]  }
 0x308   :  { %v728_v56 = vpop.f32.mrb[4].mxu0 }
 0x309   :  { %v730_v57 = vpop.f32.mrb[5].mxu0 }
 0x30a   :  { %v732_v59 = vpop.f32.mrb[6].mxu0 }
 0x30b   :  { %v739_v61 = vpack.c.bf16 %v732_v59, %v728_v56  ;;  %v734_v62 = vpop.f32.mrb[7].mxu0  ;;  %v3751_v59 = vld [vmem:[#allocation6 + $0x4e0] ss:$8 sps:$4 sm:$0xff]  }
 0x30c   :  { %v740_v63 = vpack.c.bf16 %v734_v62, %v730_v57  ;;  %v3757_v62 = vld [vmem:[#allocation6 + $0x500] ss:$8 sps:$4 sm:$0xff]  }
 0x30d   :  { %v768_v1 = vadd.bf16 %v760_v58, %v739_v61  ;;  %v3753_v58 = vld [vmem:[#allocation6 + $0x4e4] ss:$8 sps:$4 sm:$0xff]   ;;  %v3754_v61 = vld [vmem:[#allocation6 + $0x4f0] ss:$8 sps:$4 sm:$0xff]  }
 0x30e   :  { %v769_v2 = vadd.bf16 %v767_v60, %v740_v63  ;;  %v3756_v60 = vld [vmem:[#allocation6 + $0x4f4] ss:$8 sps:$4 sm:$0xff]   ;;  %v3759_v63 = vld [vmem:[#allocation6 + $0x504] ss:$8 sps:$4 sm:$0xff]  }
 0x30f   :  { %v770_v4 = vmax.bf16 %v4165_v0, %v768_v1  ;;  %v3762_v1 = vld [vmem:[#allocation6 + $0x514] ss:$8 sps:$4 sm:$0xff]   ;;  %1778 = vmatprep.subr.bf16.mxu0 %v3759_v63  ;;  %v3820_v63 = vld [vmem:[#allocation6 + $0x650] ss:$8 sps:$4 sm:$0xff]  }
 0x310   :  { %v771_v3 = vmax.bf16 %v4165_v0, %v769_v2  ;;  %v3760_v2 = vld [vmem:[#allocation6 + $0x510] ss:$8 sps:$4 sm:$0xff]  }
 0x312   :  { %997 = vmatprep.mubr.bf16.mxu1 %v771_v3  ;;  %v3765_v3 = vld [vmem:[#allocation6 + $0x524] ss:$8 sps:$4 sm:$0xff]  }
 0x313   :  { %998 = vmatmul.mubr.bf16.vlgmr.msra.gmra.mrb[4].mxu1 %v770_v4  ;;  %v3763_v4 = vld [vmem:[#allocation6 + $0x520] ss:$8 sps:$4 sm:$0xff]  }
 0x314   :  { %1508 = vmatpush1.bf16.msra.mxu1 %v3709_v11  ;;  %v3774_v11 = vld [vmem:[#allocation6 + $0x554] ss:$8 sps:$4 sm:$0xff]  }
 0x315   :  { %1509 = vmatprep.subr.bf16.mxu1 %v3714_v13  ;;  %v3777_v13 = vld [vmem:[#allocation6 + $0x564] ss:$8 sps:$4 sm:$0xff]  }
 0x318   :  { %1510 = vmatpush1.bf16.msra.mxu1 %v3712_v14  ;;  %v3775_v14 = vld [vmem:[#allocation6 + $0x560] ss:$8 sps:$4 sm:$0xff]  }
 0x319   :  { %1511 = vmatprep.subr.bf16.mxu1 %v3717_v15  ;;  %v3780_v15 = vld [vmem:[#allocation6 + $0x574] ss:$8 sps:$4 sm:$0xff]  }
 0x31c   :  { %1512 = vmatpush1.bf16.msra.mxu1 %v3715_v16  ;;  %v3778_v16 = vld [vmem:[#allocation6 + $0x570] ss:$8 sps:$4 sm:$0xff]  }
 0x31d   :  { %1513 = vmatprep.subr.bf16.mxu1 %v3720_v17  ;;  %v3783_v17 = vld [vmem:[#allocation6 + $0x584] ss:$8 sps:$4 sm:$0xff]  }
 0x320   :  { %1514 = vmatpush1.bf16.msra.mxu1 %v3718_v18  ;;  %v3781_v18 = vld [vmem:[#allocation6 + $0x580] ss:$8 sps:$4 sm:$0xff]  }
 0x321   :  { %1515 = vmatprep.subr.bf16.mxu1 %v3723_v19  ;;  %v3786_v19 = vld [vmem:[#allocation6 + $0x594] ss:$8 sps:$4 sm:$0xff]  }
 0x324   :  { %1516 = vmatpush1.bf16.msra.mxu1 %v3721_v20  ;;  %v3784_v20 = vld [vmem:[#allocation6 + $0x590] ss:$8 sps:$4 sm:$0xff]  }
 0x325   :  { %1517 = vmatprep.subr.bf16.mxu1 %v3726_v21  ;;  %v3789_v21 = vld [vmem:[#allocation6 + $0x5a4] ss:$8 sps:$4 sm:$0xff]  }
 0x328   :  { %1518 = vmatpush1.bf16.msra.mxu1 %v3724_v22  ;;  %v3787_v22 = vld [vmem:[#allocation6 + $0x5a0] ss:$8 sps:$4 sm:$0xff]  }
 0x329   :  { %1519 = vmatprep.subr.bf16.mxu1 %v3729_v23  ;;  %v3792_v23 = vld [vmem:[#allocation6 + $0x5b4] ss:$8 sps:$4 sm:$0xff]  }
 0x32c   :  { %1520 = vmatpush1.bf16.msra.mxu1 %v3727_v24  ;;  %v3790_v24 = vld [vmem:[#allocation6 + $0x5b0] ss:$8 sps:$4 sm:$0xff]  }
 0x32d   :  { %1521 = vmatprep.subr.bf16.mxu1 %v3732_v25  ;;  %v3795_v25 = vld [vmem:[#allocation6 + $0x5c4] ss:$8 sps:$4 sm:$0xff]  }
 0x330   :  { %1522 = vmatpush1.bf16.msra.mxu1 %v3730_v26  ;;  %v3793_v26 = vld [vmem:[#allocation6 + $0x5c0] ss:$8 sps:$4 sm:$0xff]  }
 0x331   :  { %1523 = vmatprep.subr.bf16.mxu1 %v3735_v27  ;;  %v3798_v27 = vld [vmem:[#allocation6 + $0x5d4] ss:$8 sps:$4 sm:$0xff]  }
 0x334   :  { %1524 = vmatpush1.bf16.msra.mxu1 %v3733_v28  ;;  %v3796_v28 = vld [vmem:[#allocation6 + $0x5d0] ss:$8 sps:$4 sm:$0xff]  }
 0x335   :  { %1525 = vmatprep.subr.bf16.mxu1 %v3738_v29  ;;  %v1280_v29 = vld [vmem:[#allocation7 + $0x3] ss:$8 sm:$0x3] }
 0x338   :  { %1526 = vmatpush1.bf16.msra.mxu1 %v3736_v30  ;;  %v1287_v30 = vrot.slane %v1280_v29, %v4291_v10 }
 0x339   :  { %1527 = vmatprep.subr.bf16.mxu1 %v3741_v31  ;;  %v1291_v31 = vrot.slane %v1280_v29, %v4289_v8 }
 0x33c   :  { %1528 = vmatpush1.bf16.msra.mxu1 %v3739_v32  ;;  %v1294_v32 = vpack.c.bf16 %v1287_v30, %v1287_v30 }
 0x33d   :  { %1529 = vmatprep.subr.bf16.mxu1 %v3744_v33  ;;  %v1295_v33 = vpack.c.bf16 %v1291_v31, %v1291_v31 }
 0x340   :  { %1530 = vmatpush1.bf16.msra.mxu1 %v3742_v34  ;;  %v1297_v34 = vpack.i.b16 %v1294_v32, %v1294_v32 }
 0x341   :  { %1531 = vmatprep.subr.bf16.mxu1 %v3747_v35  ;;  %v1304_v35 = vpack.i.b16 %v1295_v33, %v1295_v33 }
 0x343   :  { %v1309_v40 = vrot.slane %v1304_v35, %v4291_v10 }
 0x344   :  { %1532 = vmatpush1.bf16.msra.mxu1 %v3745_v36 }
 0x345   :  { %1533 = vmatprep.subr.bf16.mxu1 %v3750_v37 }
 0x348   :  { %1534 = vmatpush1.bf16.msra.mxu1 %v3748_v38  ;;  %v1302_v38 = vrot.slane %v1297_v34, %v4291_v10 }
 0x349   :  { %1535 = vmatprep.subr.bf16.mxu1 %v3753_v58  ;;  %v3816_v58 = vld [vmem:[#allocation6 + $0x634] ss:$8 sps:$4 sm:$0xff]  }
 0x34c   :  { %1536 = vmatpush1.bf16.msra.mxu1 %v3751_v59  ;;  %v3814_v59 = vld [vmem:[#allocation6 + $0x630] ss:$8 sps:$4 sm:$0xff]  }
 0x34d   :  { %1537 = vmatprep.subr.bf16.mxu1 %v3756_v60  ;;  %v3819_v60 = vld [vmem:[#allocation6 + $0x644] ss:$8 sps:$4 sm:$0xff]  }
 0x350   :  { %1538 = vmatpush1.bf16.msra.mxu1 %v3754_v61  ;;  %v3817_v61 = vld [vmem:[#allocation6 + $0x640] ss:$8 sps:$4 sm:$0xff]  }
 0x3e6   :  { %v999_v46 = vpop.f32.mrb[4].mxu1 }
 0x3e7   :  { %v1001_v47 = vpop.f32.mrb[5].mxu1 }
 0x3e8   :  { %v1003_v49 = vpop.f32.mrb[6].mxu1 }
 0x3e9   :  { %v1010_v51 = vpack.c.bf16 %v1003_v49, %v999_v46  ;;  %v1005_v52 = vpop.f32.mrb[7].mxu1  ;;  %v3799_v49 = vld [vmem:[#allocation6 + $0x5e0] ss:$8 sps:$4 sm:$0xff]  }
 0x3ea   :  { %v1011_v53 = vpack.c.bf16 %v1005_v52, %v1001_v47  ;;  %v3805_v52 = vld [vmem:[#allocation6 + $0x600] ss:$8 sps:$4 sm:$0xff]  }
 0x3eb   :  { %v1039_v54 = vadd.bf16 %v1031_v48, %v1010_v51  ;;  %v3801_v48 = vld [vmem:[#allocation6 + $0x5e4] ss:$8 sps:$4 sm:$0xff]   ;;  %v3802_v51 = vld [vmem:[#allocation6 + $0x5f0] ss:$8 sps:$4 sm:$0xff]  }
 0x3ec   :  { %v1040_v55 = vadd.bf16 %v1038_v50, %v1011_v53  ;;  %v3804_v50 = vld [vmem:[#allocation6 + $0x5f4] ss:$8 sps:$4 sm:$0xff]   ;;  %v3807_v53 = vld [vmem:[#allocation6 + $0x604] ss:$8 sps:$4 sm:$0xff]  }
 0x3ed   :  { %v1041_v57 = vmax.bf16 %v4165_v0, %v1039_v54  ;;  %v3810_v54 = vld [vmem:[#allocation6 + $0x614] ss:$8 sps:$4 sm:$0xff]   ;;  %2049 = vmatprep.subr.bf16.mxu1 %v3807_v53  ;;  %v3868_v53 = vld [vmem:[#allocation6 + $0x750] ss:$8 sps:$4 sm:$0xff]  }
 0x3ee   :  { %v1042_v56 = vmax.bf16 %v4165_v0, %v1040_v55  ;;  %v3808_v55 = vld [vmem:[#allocation6 + $0x610] ss:$8 sps:$4 sm:$0xff]  }
 0x3f0   :  { %1268 = vmatprep.mubr.bf16.mxu0 %v1042_v56  ;;  %v3813_v56 = vld [vmem:[#allocation6 + $0x624] ss:$8 sps:$4 sm:$0xff]  }
 0x3f1   :  { %1269 = vmatmul.mubr.bf16.vlgmr.msra.gmra.mrb[8].mxu0 %v1041_v57  ;;  %v3811_v57 = vld [vmem:[#allocation6 + $0x620] ss:$8 sps:$4 sm:$0xff]  }
 0x3f2   :  { %1779 = vmatpush1.bf16.msra.mxu0 %v3757_v62  ;;  %v3822_v62 = vld [vmem:[#allocation6 + $0x654] ss:$8 sps:$4 sm:$0xff]  }
 0x3f3   :  { %1780 = vmatprep.subr.bf16.mxu0 %v3762_v1  ;;  %v3825_v1 = vld [vmem:[#allocation6 + $0x664] ss:$8 sps:$4 sm:$0xff]  }
 0x3f6   :  { %1781 = vmatpush1.bf16.msra.mxu0 %v3760_v2  ;;  %v3823_v2 = vld [vmem:[#allocation6 + $0x660] ss:$8 sps:$4 sm:$0xff]  }
 0x3f7   :  { %1782 = vmatprep.subr.bf16.mxu0 %v3765_v3  ;;  %v3828_v3 = vld [vmem:[#allocation6 + $0x674] ss:$8 sps:$4 sm:$0xff]  }
 0x3fa   :  { %1783 = vmatpush1.bf16.msra.mxu0 %v3763_v4  ;;  %v3826_v4 = vld [vmem:[#allocation6 + $0x670] ss:$8 sps:$4 sm:$0xff]  }
 0x3fb   :  { %1784 = vmatprep.subr.bf16.mxu0 %v3768_v5  ;;  %v3831_v5 = vld [vmem:[#allocation6 + $0x684] ss:$8 sps:$4 sm:$0xff]  }
 0x3fe   :  { %1785 = vmatpush1.bf16.msra.mxu0 %v3766_v6  ;;  %v3829_v6 = vld [vmem:[#allocation6 + $0x680] ss:$8 sps:$4 sm:$0xff]  }
 0x3ff   :  { %1786 = vmatprep.subr.bf16.mxu0 %v3771_v7  ;;  %v3834_v7 = vld [vmem:[#allocation6 + $0x694] ss:$8 sps:$4 sm:$0xff]  }
 0x402   :  { %1787 = vmatpush1.bf16.msra.mxu0 %v3769_v9  ;;  %v3832_v9 = vld [vmem:[#allocation6 + $0x690] ss:$8 sps:$4 sm:$0xff]  }
 0x403   :  { %1788 = vmatprep.subr.bf16.mxu0 %v3774_v11  ;;  %v3837_v11 = vld [vmem:[#allocation6 + $0x6a4] ss:$8 sps:$4 sm:$0xff]  }
 0x406   :  { %1789 = vmatpush1.bf16.msra.mxu0 %v3772_v12  ;;  %v3835_v12 = vld [vmem:[#allocation6 + $0x6a0] ss:$8 sps:$4 sm:$0xff]  }
 0x407   :  { %1790 = vmatprep.subr.bf16.mxu0 %v3777_v13  ;;  %v3840_v13 = vld [vmem:[#allocation6 + $0x6b4] ss:$8 sps:$4 sm:$0xff]  }
 0x40a   :  { %1791 = vmatpush1.bf16.msra.mxu0 %v3775_v14  ;;  %v3838_v14 = vld [vmem:[#allocation6 + $0x6b0] ss:$8 sps:$4 sm:$0xff]  }
 0x40b   :  { %1792 = vmatprep.subr.bf16.mxu0 %v3780_v15  ;;  %v3843_v15 = vld [vmem:[#allocation6 + $0x6c4] ss:$8 sps:$4 sm:$0xff]  }
 0x40e   :  { %1793 = vmatpush1.bf16.msra.mxu0 %v3778_v16  ;;  %v3841_v16 = vld [vmem:[#allocation6 + $0x6c0] ss:$8 sps:$4 sm:$0xff]  }
 0x40f   :  { %1794 = vmatprep.subr.bf16.mxu0 %v3783_v17  ;;  %v3846_v17 = vld [vmem:[#allocation6 + $0x6d4] ss:$8 sps:$4 sm:$0xff]  }
 0x412   :  { %1795 = vmatpush1.bf16.msra.mxu0 %v3781_v18  ;;  %v3844_v18 = vld [vmem:[#allocation6 + $0x6d0] ss:$8 sps:$4 sm:$0xff]  }
 0x413   :  { %1796 = vmatprep.subr.bf16.mxu0 %v3786_v19  ;;  %v1551_v19 = vld [vmem:[#allocation7 + $0x4] ss:$8 sm:$0x3] }
 0x416   :  { %1797 = vmatpush1.bf16.msra.mxu0 %v3784_v20  ;;  %v1558_v20 = vrot.slane %v1551_v19, %v4291_v10 }
 0x417   :  { %1798 = vmatprep.subr.bf16.mxu0 %v3789_v21  ;;  %v1562_v21 = vrot.slane %v1551_v19, %v4289_v8 }
 0x41a   :  { %1799 = vmatpush1.bf16.msra.mxu0 %v3787_v22  ;;  %v1565_v22 = vpack.c.bf16 %v1558_v20, %v1558_v20 }
 0x41b   :  { %1800 = vmatprep.subr.bf16.mxu0 %v3792_v23  ;;  %v1566_v23 = vpack.c.bf16 %v1562_v21, %v1562_v21 }
 0x41e   :  { %1801 = vmatpush1.bf16.msra.mxu0 %v3790_v24  ;;  %v1568_v24 = vpack.i.b16 %v1565_v22, %v1565_v22 }
 0x41f   :  { %1802 = vmatprep.subr.bf16.mxu0 %v3795_v25  ;;  %v1575_v25 = vpack.i.b16 %v1566_v23, %v1566_v23 }
 0x421   :  { %v1580_v30 = vrot.slane %v1575_v25, %v4291_v10 }
 0x422   :  { %1803 = vmatpush1.bf16.msra.mxu0 %v3793_v26 }
 0x423   :  { %1804 = vmatprep.subr.bf16.mxu0 %v3798_v27 }
 0x426   :  { %1805 = vmatpush1.bf16.msra.mxu0 %v3796_v28  ;;  %v1573_v28 = vrot.slane %v1568_v24, %v4291_v10 }
 0x427   :  { %1806 = vmatprep.subr.bf16.mxu0 %v3801_v48  ;;  %v3864_v48 = vld [vmem:[#allocation6 + $0x734] ss:$8 sps:$4 sm:$0xff]  }
 0x42a   :  { %1807 = vmatpush1.bf16.msra.mxu0 %v3799_v49  ;;  %v3862_v49 = vld [vmem:[#allocation6 + $0x730] ss:$8 sps:$4 sm:$0xff]  }
 0x42b   :  { %1808 = vmatprep.subr.bf16.mxu0 %v3804_v50  ;;  %v3867_v50 = vld [vmem:[#allocation6 + $0x744] ss:$8 sps:$4 sm:$0xff]  }
 0x42e   :  { %1809 = vmatpush1.bf16.msra.mxu0 %v3802_v51  ;;  %v3865_v51 = vld [vmem:[#allocation6 + $0x740] ss:$8 sps:$4 sm:$0xff]  }
 0x4c4   :  { %v1270_v36 = vpop.f32.mrb[8].mxu0 }
 0x4c5   :  { %v1272_v37 = vpop.f32.mrb[9].mxu0 }
 0x4c6   :  { %v1274_v39 = vpop.f32.mrb[10].mxu0 }
 0x4c7   :  { %v1281_v41 = vpack.c.bf16 %v1274_v39, %v1270_v36  ;;  %v1276_v42 = vpop.f32.mrb[11].mxu0  ;;  %v3847_v39 = vld [vmem:[#allocation6 + $0x6e0] ss:$8 sps:$4 sm:$0xff]  }
 0x4c8   :  { %v1282_v43 = vpack.c.bf16 %v1276_v42, %v1272_v37  ;;  %v3853_v42 = vld [vmem:[#allocation6 + $0x700] ss:$8 sps:$4 sm:$0xff]  }
 0x4c9   :  { %v1310_v44 = vadd.bf16 %v1302_v38, %v1281_v41  ;;  %v3849_v38 = vld [vmem:[#allocation6 + $0x6e4] ss:$8 sps:$4 sm:$0xff]   ;;  %v3850_v41 = vld [vmem:[#allocation6 + $0x6f0] ss:$8 sps:$4 sm:$0xff]  }
 0x4ca   :  { %v1311_v45 = vadd.bf16 %v1309_v40, %v1282_v43  ;;  %v3852_v40 = vld [vmem:[#allocation6 + $0x6f4] ss:$8 sps:$4 sm:$0xff]   ;;  %v3855_v43 = vld [vmem:[#allocation6 + $0x704] ss:$8 sps:$4 sm:$0xff]  }
 0x4cb   :  { %v1312_v47 = vmax.bf16 %v4165_v0, %v1310_v44  ;;  %v3858_v44 = vld [vmem:[#allocation6 + $0x714] ss:$8 sps:$4 sm:$0xff]   ;;  %2320 = vmatprep.subr.bf16.mxu0 %v3855_v43  ;;  %v3916_v43 = vld [vmem:[#allocation6 + $0x850] ss:$8 sps:$4 sm:$0xff]  }
 0x4cc   :  { %v1313_v46 = vmax.bf16 %v4165_v0, %v1311_v45  ;;  %v3856_v45 = vld [vmem:[#allocation6 + $0x710] ss:$8 sps:$4 sm:$0xff]  }
 0x4ce   :  { %1539 = vmatprep.mubr.bf16.mxu1 %v1313_v46  ;;  %v3861_v46 = vld [vmem:[#allocation6 + $0x724] ss:$8 sps:$4 sm:$0xff]  }
 0x4cf   :  { %1540 = vmatmul.mubr.bf16.vlgmr.msra.gmra.mrb[8].mxu1 %v1312_v47  ;;  %v3859_v47 = vld [vmem:[#allocation6 + $0x720] ss:$8 sps:$4 sm:$0xff]  }
 0x4d0   :  { %2050 = vmatpush1.bf16.msra.mxu1 %v3805_v52  ;;  %v3870_v52 = vld [vmem:[#allocation6 + $0x754] ss:$8 sps:$4 sm:$0xff]  }
 0x4d1   :  { %2051 = vmatprep.subr.bf16.mxu1 %v3810_v54  ;;  %v3873_v54 = vld [vmem:[#allocation6 + $0x764] ss:$8 sps:$4 sm:$0xff]  }
 0x4d4   :  { %2052 = vmatpush1.bf16.msra.mxu1 %v3808_v55  ;;  %v3871_v55 = vld [vmem:[#allocation6 + $0x760] ss:$8 sps:$4 sm:$0xff]  }
 0x4d5   :  { %2053 = vmatprep.subr.bf16.mxu1 %v3813_v56  ;;  %v3876_v56 = vld [vmem:[#allocation6 + $0x774] ss:$8 sps:$4 sm:$0xff]  }
 0x4d8   :  { %2054 = vmatpush1.bf16.msra.mxu1 %v3811_v57  ;;  %v3874_v57 = vld [vmem:[#allocation6 + $0x770] ss:$8 sps:$4 sm:$0xff]  }
 0x4d9   :  { %2055 = vmatprep.subr.bf16.mxu1 %v3816_v58  ;;  %v3879_v58 = vld [vmem:[#allocation6 + $0x784] ss:$8 sps:$4 sm:$0xff]  }
 0x4dc   :  { %2056 = vmatpush1.bf16.msra.mxu1 %v3814_v59  ;;  %v3877_v59 = vld [vmem:[#allocation6 + $0x780] ss:$8 sps:$4 sm:$0xff]  }
 0x4dd   :  { %2057 = vmatprep.subr.bf16.mxu1 %v3819_v60  ;;  %v3882_v60 = vld [vmem:[#allocation6 + $0x794] ss:$8 sps:$4 sm:$0xff]  }
 0x4e0   :  { %2058 = vmatpush1.bf16.msra.mxu1 %v3817_v61  ;;  %v3880_v61 = vld [vmem:[#allocation6 + $0x790] ss:$8 sps:$4 sm:$0xff]  }
 0x4e1   :  { %2059 = vmatprep.subr.bf16.mxu1 %v3822_v62  ;;  %v3885_v62 = vld [vmem:[#allocation6 + $0x7a4] ss:$8 sps:$4 sm:$0xff]  }
 0x4e4   :  { %2060 = vmatpush1.bf16.msra.mxu1 %v3820_v63  ;;  %v3883_v63 = vld [vmem:[#allocation6 + $0x7a0] ss:$8 sps:$4 sm:$0xff]  }
 0x4e5   :  { %2061 = vmatprep.subr.bf16.mxu1 %v3825_v1  ;;  %v3888_v1 = vld [vmem:[#allocation6 + $0x7b4] ss:$8 sps:$4 sm:$0xff]  }
 0x4e8   :  { %2062 = vmatpush1.bf16.msra.mxu1 %v3823_v2  ;;  %v3886_v2 = vld [vmem:[#allocation6 + $0x7b0] ss:$8 sps:$4 sm:$0xff]  }
 0x4e9   :  { %2063 = vmatprep.subr.bf16.mxu1 %v3828_v3  ;;  %v3891_v3 = vld [vmem:[#allocation6 + $0x7c4] ss:$8 sps:$4 sm:$0xff]  }
 0x4ec   :  { %2064 = vmatpush1.bf16.msra.mxu1 %v3826_v4  ;;  %v3889_v4 = vld [vmem:[#allocation6 + $0x7c0] ss:$8 sps:$4 sm:$0xff]  }
 0x4ed   :  { %2065 = vmatprep.subr.bf16.mxu1 %v3831_v5  ;;  %v3894_v5 = vld [vmem:[#allocation6 + $0x7d4] ss:$8 sps:$4 sm:$0xff]  }
 0x4f0   :  { %2066 = vmatpush1.bf16.msra.mxu1 %v3829_v6  ;;  %v3892_v6 = vld [vmem:[#allocation6 + $0x7d0] ss:$8 sps:$4 sm:$0xff]  }
 0x4f1   :  { %2067 = vmatprep.subr.bf16.mxu1 %v3834_v7  ;;  %v1822_v7 = vld [vmem:[#allocation7 + $0x5] ss:$8 sm:$0x3] }
 0x4f4   :  { %2068 = vmatpush1.bf16.msra.mxu1 %v3832_v9  ;;  %v1829_v9 = vrot.slane %v1822_v7, %v4291_v10 }
 0x4f5   :  { %2069 = vmatprep.subr.bf16.mxu1 %v3837_v11  ;;  %v1833_v11 = vrot.slane %v1822_v7, %v4289_v8 }
 0x4f8   :  { %2070 = vmatpush1.bf16.msra.mxu1 %v3835_v12  ;;  %v1836_v12 = vpack.c.bf16 %v1829_v9, %v1829_v9 }
 0x4f9   :  { %2071 = vmatprep.subr.bf16.mxu1 %v3840_v13  ;;  %v1837_v13 = vpack.c.bf16 %v1833_v11, %v1833_v11 }
 0x4fc   :  { %2072 = vmatpush1.bf16.msra.mxu1 %v3838_v14  ;;  %v1839_v14 = vpack.i.b16 %v1836_v12, %v1836_v12 }
 0x4fd   :  { %2073 = vmatprep.subr.bf16.mxu1 %v3843_v15  ;;  %v1846_v15 = vpack.i.b16 %v1837_v13, %v1837_v13 }
 0x4ff   :  { %v1851_v20 = vrot.slane %v1846_v15, %v4291_v10 }
 0x500   :  { %2074 = vmatpush1.bf16.msra.mxu1 %v3841_v16 }
 0x501   :  { %2075 = vmatprep.subr.bf16.mxu1 %v3846_v17 }
 0x504   :  { %2076 = vmatpush1.bf16.msra.mxu1 %v3844_v18  ;;  %v1844_v18 = vrot.slane %v1839_v14, %v4291_v10 }
 0x505   :  { %2077 = vmatprep.subr.bf16.mxu1 %v3849_v38  ;;  %v3912_v38 = vld [vmem:[#allocation6 + $0x834] ss:$8 sps:$4 sm:$0xff]  }
 0x508   :  { %2078 = vmatpush1.bf16.msra.mxu1 %v3847_v39  ;;  %v3910_v39 = vld [vmem:[#allocation6 + $0x830] ss:$8 sps:$4 sm:$0xff]  }
 0x509   :  { %2079 = vmatprep.subr.bf16.mxu1 %v3852_v40  ;;  %v3915_v40 = vld [vmem:[#allocation6 + $0x844] ss:$8 sps:$4 sm:$0xff]  }
 0x50c   :  { %2080 = vmatpush1.bf16.msra.mxu1 %v3850_v41  ;;  %v3913_v41 = vld [vmem:[#allocation6 + $0x840] ss:$8 sps:$4 sm:$0xff]  }
 0x5a2   :  { %v1541_v26 = vpop.f32.mrb[8].mxu1 }
 0x5a3   :  { %v1543_v27 = vpop.f32.mrb[9].mxu1 }
 0x5a4   :  { %v1545_v29 = vpop.f32.mrb[10].mxu1 }
 0x5a5   :  { %v1552_v31 = vpack.c.bf16 %v1545_v29, %v1541_v26  ;;  %v1547_v32 = vpop.f32.mrb[11].mxu1  ;;  %v3895_v29 = vld [vmem:[#allocation6 + $0x7e0] ss:$8 sps:$4 sm:$0xff]  }
 0x5a6   :  { %v1553_v33 = vpack.c.bf16 %v1547_v32, %v1543_v27  ;;  %v3901_v32 = vld [vmem:[#allocation6 + $0x800] ss:$8 sps:$4 sm:$0xff]  }
 0x5a7   :  { %v1581_v34 = vadd.bf16 %v1573_v28, %v1552_v31  ;;  %v3897_v28 = vld [vmem:[#allocation6 + $0x7e4] ss:$8 sps:$4 sm:$0xff]   ;;  %v3898_v31 = vld [vmem:[#allocation6 + $0x7f0] ss:$8 sps:$4 sm:$0xff]  }
 0x5a8   :  { %v1582_v35 = vadd.bf16 %v1580_v30, %v1553_v33  ;;  %v3900_v30 = vld [vmem:[#allocation6 + $0x7f4] ss:$8 sps:$4 sm:$0xff]   ;;  %v3903_v33 = vld [vmem:[#allocation6 + $0x804] ss:$8 sps:$4 sm:$0xff]  }
 0x5a9   :  { %v1583_v37 = vmax.bf16 %v4165_v0, %v1581_v34  ;;  %v3906_v34 = vld [vmem:[#allocation6 + $0x814] ss:$8 sps:$4 sm:$0xff]   ;;  %2591 = vmatprep.subr.bf16.mxu1 %v3903_v33  ;;  %v3964_v33 = vld [vmem:[#allocation6 + $0x950] ss:$8 sps:$4 sm:$0xff]  }
 0x5aa   :  { %v1584_v36 = vmax.bf16 %v4165_v0, %v1582_v35  ;;  %v3904_v35 = vld [vmem:[#allocation6 + $0x810] ss:$8 sps:$4 sm:$0xff]  }
 0x5ac   :  { %1810 = vmatprep.mubr.bf16.mxu0 %v1584_v36  ;;  %v3909_v36 = vld [vmem:[#allocation6 + $0x824] ss:$8 sps:$4 sm:$0xff]  }
 0x5ad   :  { %1811 = vmatmul.mubr.bf16.vlgmr.msra.gmra.mrb[12].mxu0 %v1583_v37  ;;  %v3907_v37 = vld [vmem:[#allocation6 + $0x820] ss:$8 sps:$4 sm:$0xff]  }
 0x5ae   :  { %2321 = vmatpush1.bf16.msra.mxu0 %v3853_v42  ;;  %v3918_v42 = vld [vmem:[#allocation6 + $0x854] ss:$8 sps:$4 sm:$0xff]  }
 0x5af   :  { %2322 = vmatprep.subr.bf16.mxu0 %v3858_v44  ;;  %v3921_v44 = vld [vmem:[#allocation6 + $0x864] ss:$8 sps:$4 sm:$0xff]  }
 0x5b2   :  { %2323 = vmatpush1.bf16.msra.mxu0 %v3856_v45  ;;  %v3919_v45 = vld [vmem:[#allocation6 + $0x860] ss:$8 sps:$4 sm:$0xff]  }
 0x5b3   :  { %2324 = vmatprep.subr.bf16.mxu0 %v3861_v46  ;;  %v3924_v46 = vld [vmem:[#allocation6 + $0x874] ss:$8 sps:$4 sm:$0xff]  }
 0x5b6   :  { %2325 = vmatpush1.bf16.msra.mxu0 %v3859_v47  ;;  %v3922_v47 = vld [vmem:[#allocation6 + $0x870] ss:$8 sps:$4 sm:$0xff]  }
 0x5b7   :  { %2326 = vmatprep.subr.bf16.mxu0 %v3864_v48  ;;  %v3927_v48 = vld [vmem:[#allocation6 + $0x884] ss:$8 sps:$4 sm:$0xff]  }
 0x5ba   :  { %2327 = vmatpush1.bf16.msra.mxu0 %v3862_v49  ;;  %v3925_v49 = vld [vmem:[#allocation6 + $0x880] ss:$8 sps:$4 sm:$0xff]  }
 0x5bb   :  { %2328 = vmatprep.subr.bf16.mxu0 %v3867_v50  ;;  %v3930_v50 = vld [vmem:[#allocation6 + $0x894] ss:$8 sps:$4 sm:$0xff]  }
 0x5be   :  { %2329 = vmatpush1.bf16.msra.mxu0 %v3865_v51  ;;  %v3928_v51 = vld [vmem:[#allocation6 + $0x890] ss:$8 sps:$4 sm:$0xff]  }
 0x5bf   :  { %2330 = vmatprep.subr.bf16.mxu0 %v3870_v52  ;;  %v3933_v52 = vld [vmem:[#allocation6 + $0x8a4] ss:$8 sps:$4 sm:$0xff]  }
 0x5c2   :  { %2331 = vmatpush1.bf16.msra.mxu0 %v3868_v53  ;;  %v3931_v53 = vld [vmem:[#allocation6 + $0x8a0] ss:$8 sps:$4 sm:$0xff]  }
 0x5c3   :  { %2332 = vmatprep.subr.bf16.mxu0 %v3873_v54  ;;  %v3936_v54 = vld [vmem:[#allocation6 + $0x8b4] ss:$8 sps:$4 sm:$0xff]  }
 0x5c6   :  { %2333 = vmatpush1.bf16.msra.mxu0 %v3871_v55  ;;  %v3934_v55 = vld [vmem:[#allocation6 + $0x8b0] ss:$8 sps:$4 sm:$0xff]  }
 0x5c7   :  { %2334 = vmatprep.subr.bf16.mxu0 %v3876_v56  ;;  %v3939_v56 = vld [vmem:[#allocation6 + $0x8c4] ss:$8 sps:$4 sm:$0xff]  }
 0x5ca   :  { %2335 = vmatpush1.bf16.msra.mxu0 %v3874_v57  ;;  %v3937_v57 = vld [vmem:[#allocation6 + $0x8c0] ss:$8 sps:$4 sm:$0xff]  }
 0x5cb   :  { %2336 = vmatprep.subr.bf16.mxu0 %v3879_v58  ;;  %v3942_v58 = vld [vmem:[#allocation6 + $0x8d4] ss:$8 sps:$4 sm:$0xff]  }
 0x5ce   :  { %2337 = vmatpush1.bf16.msra.mxu0 %v3877_v59  ;;  %v3940_v59 = vld [vmem:[#allocation6 + $0x8d0] ss:$8 sps:$4 sm:$0xff]  }
 0x5cf   :  { %2338 = vmatprep.subr.bf16.mxu0 %v3882_v60  ;;  %v2093_v60 = vld [vmem:[#allocation7 + $0x6] ss:$8 sm:$0x3] }
 0x5d2   :  { %2339 = vmatpush1.bf16.msra.mxu0 %v3880_v61  ;;  %v2100_v61 = vrot.slane %v2093_v60, %v4291_v10 }
 0x5d3   :  { %2340 = vmatprep.subr.bf16.mxu0 %v3885_v62  ;;  %v2104_v62 = vrot.slane %v2093_v60, %v4289_v8 }
 0x5d6   :  { %2341 = vmatpush1.bf16.msra.mxu0 %v3883_v63  ;;  %v2107_v63 = vpack.c.bf16 %v2100_v61, %v2100_v61 }
 0x5d7   :  { %2342 = vmatprep.subr.bf16.mxu0 %v3888_v1  ;;  %v2108_v1 = vpack.c.bf16 %v2104_v62, %v2104_v62 }
 0x5da   :  { %2343 = vmatpush1.bf16.msra.mxu0 %v3886_v2  ;;  %v2110_v2 = vpack.i.b16 %v2107_v63, %v2107_v63 }
 0x5db   :  { %2344 = vmatprep.subr.bf16.mxu0 %v3891_v3  ;;  %v2117_v3 = vpack.i.b16 %v2108_v1, %v2108_v1 }
 0x5dd   :  { %v2122_v9 = vrot.slane %v2117_v3, %v4291_v10 }
 0x5de   :  { %2345 = vmatpush1.bf16.msra.mxu0 %v3889_v4 }
 0x5df   :  { %2346 = vmatprep.subr.bf16.mxu0 %v3894_v5 }
 0x5e2   :  { %2347 = vmatpush1.bf16.msra.mxu0 %v3892_v6  ;;  %v2115_v6 = vrot.slane %v2110_v2, %v4291_v10 }
 0x5e3   :  { %2348 = vmatprep.subr.bf16.mxu0 %v3897_v28  ;;  %v3960_v28 = vld [vmem:[#allocation6 + $0x934] ss:$8 sps:$4 sm:$0xff]  }
 0x5e6   :  { %2349 = vmatpush1.bf16.msra.mxu0 %v3895_v29  ;;  %v3958_v29 = vld [vmem:[#allocation6 + $0x930] ss:$8 sps:$4 sm:$0xff]  }
 0x5e7   :  { %2350 = vmatprep.subr.bf16.mxu0 %v3900_v30  ;;  %v3963_v30 = vld [vmem:[#allocation6 + $0x944] ss:$8 sps:$4 sm:$0xff]  }
 0x5ea   :  { %2351 = vmatpush1.bf16.msra.mxu0 %v3898_v31  ;;  %v3961_v31 = vld [vmem:[#allocation6 + $0x940] ss:$8 sps:$4 sm:$0xff]  }
 0x680   :  { %v1812_v16 = vpop.f32.mrb[12].mxu0 }
 0x681   :  { %v1814_v17 = vpop.f32.mrb[13].mxu0 }
 0x682   :  { %v1816_v19 = vpop.f32.mrb[14].mxu0 }
 0x683   :  { %v1823_v21 = vpack.c.bf16 %v1816_v19, %v1812_v16  ;;  %v1818_v22 = vpop.f32.mrb[15].mxu0  ;;  %v3943_v19 = vld [vmem:[#allocation6 + $0x8e0] ss:$8 sps:$4 sm:$0xff]  }
 0x684   :  { %v1824_v23 = vpack.c.bf16 %v1818_v22, %v1814_v17  ;;  %v3949_v22 = vld [vmem:[#allocation6 + $0x900] ss:$8 sps:$4 sm:$0xff]  }
 0x685   :  { %v1852_v24 = vadd.bf16 %v1844_v18, %v1823_v21  ;;  %v3945_v18 = vld [vmem:[#allocation6 + $0x8e4] ss:$8 sps:$4 sm:$0xff]   ;;  %v3946_v21 = vld [vmem:[#allocation6 + $0x8f0] ss:$8 sps:$4 sm:$0xff]  }
 0x686   :  { %v1853_v25 = vadd.bf16 %v1851_v20, %v1824_v23  ;;  %v3948_v20 = vld [vmem:[#allocation6 + $0x8f4] ss:$8 sps:$4 sm:$0xff]   ;;  %v3951_v23 = vld [vmem:[#allocation6 + $0x904] ss:$8 sps:$4 sm:$0xff]  }
 0x687   :  { %v1854_v27 = vmax.bf16 %v4165_v0, %v1852_v24  ;;  %v3954_v24 = vld [vmem:[#allocation6 + $0x914] ss:$8 sps:$4 sm:$0xff]   ;;  %2862 = vmatprep.subr.bf16.mxu0 %v3951_v23  ;;  %v2635_v23 = vld [vmem:[#allocation7 + $0x10] ss:$8 sm:$0x3] }
 0x688   :  { %v1855_v26 = vmax.bf16 %v4165_v0, %v1853_v25  ;;  %v3952_v25 = vld [vmem:[#allocation6 + $0x910] ss:$8 sps:$4 sm:$0xff]  }
 0x68a   :  { %2081 = vmatprep.mubr.bf16.mxu1 %v1855_v26  ;;  %v3957_v26 = vld [vmem:[#allocation6 + $0x924] ss:$8 sps:$4 sm:$0xff]  }
 0x68b   :  { %2082 = vmatmul.mubr.bf16.vlgmr.msra.gmra.mrb[12].mxu1 %v1854_v27  ;;  %v3955_v27 = vld [vmem:[#allocation6 + $0x920] ss:$8 sps:$4 sm:$0xff]  }
 0x68c   :  { %2592 = vmatpush1.bf16.msra.mxu1 %v3901_v32  ;;  %v3966_v32 = vld [vmem:[#allocation6 + $0x954] ss:$8 sps:$4 sm:$0xff]  }
 0x68d   :  { %2593 = vmatprep.subr.bf16.mxu1 %v3906_v34  ;;  %v3969_v34 = vld [vmem:[#allocation6 + $0x964] ss:$8 sps:$4 sm:$0xff]  }
 0x690   :  { %2594 = vmatpush1.bf16.msra.mxu1 %v3904_v35  ;;  %v3967_v35 = vld [vmem:[#allocation6 + $0x960] ss:$8 sps:$4 sm:$0xff]  }
 0x691   :  { %2595 = vmatprep.subr.bf16.mxu1 %v3909_v36  ;;  %v3972_v36 = vld [vmem:[#allocation6 + $0x974] ss:$8 sps:$4 sm:$0xff]  }
 0x694   :  { %2596 = vmatpush1.bf16.msra.mxu1 %v3907_v37  ;;  %v3970_v37 = vld [vmem:[#allocation6 + $0x970] ss:$8 sps:$4 sm:$0xff]  }
 0x695   :  { %2597 = vmatprep.subr.bf16.mxu1 %v3912_v38  ;;  %v3975_v38 = vld [vmem:[#allocation6 + $0x984] ss:$8 sps:$4 sm:$0xff]  }
 0x698   :  { %2598 = vmatpush1.bf16.msra.mxu1 %v3910_v39  ;;  %v3973_v39 = vld [vmem:[#allocation6 + $0x980] ss:$8 sps:$4 sm:$0xff]  }
 0x699   :  { %2599 = vmatprep.subr.bf16.mxu1 %v3915_v40  ;;  %v3978_v40 = vld [vmem:[#allocation6 + $0x994] ss:$8 sps:$4 sm:$0xff]  }
 0x69c   :  { %2600 = vmatpush1.bf16.msra.mxu1 %v3913_v41  ;;  %v3976_v41 = vld [vmem:[#allocation6 + $0x990] ss:$8 sps:$4 sm:$0xff]  }
 0x69d   :  { %2601 = vmatprep.subr.bf16.mxu1 %v3918_v42  ;;  %v3981_v42 = vld [vmem:[#allocation6 + $0x9a4] ss:$8 sps:$4 sm:$0xff]  }
 0x6a0   :  { %2602 = vmatpush1.bf16.msra.mxu1 %v3916_v43  ;;  %v3979_v43 = vld [vmem:[#allocation6 + $0x9a0] ss:$8 sps:$4 sm:$0xff]  }
 0x6a1   :  { %2603 = vmatprep.subr.bf16.mxu1 %v3921_v44  ;;  %v3984_v44 = vld [vmem:[#allocation6 + $0x9b4] ss:$8 sps:$4 sm:$0xff]  }
 0x6a4   :  { %2604 = vmatpush1.bf16.msra.mxu1 %v3919_v45  ;;  %v3982_v45 = vld [vmem:[#allocation6 + $0x9b0] ss:$8 sps:$4 sm:$0xff]  }
 0x6a5   :  { %2605 = vmatprep.subr.bf16.mxu1 %v3924_v46  ;;  %v3987_v46 = vld [vmem:[#allocation6 + $0x9c4] ss:$8 sps:$4 sm:$0xff]  }
 0x6a8   :  { %2606 = vmatpush1.bf16.msra.mxu1 %v3922_v47  ;;  %v3985_v47 = vld [vmem:[#allocation6 + $0x9c0] ss:$8 sps:$4 sm:$0xff]  }
 0x6a9   :  { %2607 = vmatprep.subr.bf16.mxu1 %v3927_v48  ;;  %v3990_v48 = vld [vmem:[#allocation6 + $0x9d4] ss:$8 sps:$4 sm:$0xff]  }
 0x6ac   :  { %2608 = vmatpush1.bf16.msra.mxu1 %v3925_v49  ;;  %v3988_v49 = vld [vmem:[#allocation6 + $0x9d0] ss:$8 sps:$4 sm:$0xff]  }
 0x6ad   :  { %2609 = vmatprep.subr.bf16.mxu1 %v3930_v50  ;;  %v2364_v50 = vld [vmem:[#allocation7 + $0x7] ss:$8 sm:$0x3] }
 0x6b0   :  { %2610 = vmatpush1.bf16.msra.mxu1 %v3928_v51  ;;  %v2371_v51 = vrot.slane %v2364_v50, %v4291_v10 }
 0x6b1   :  { %2611 = vmatprep.subr.bf16.mxu1 %v3933_v52  ;;  %v2375_v52 = vrot.slane %v2364_v50, %v4289_v8 }
 0x6b4   :  { %2612 = vmatpush1.bf16.msra.mxu1 %v3931_v53  ;;  %v2378_v53 = vpack.c.bf16 %v2371_v51, %v2371_v51 }
 0x6b5   :  { %2613 = vmatprep.subr.bf16.mxu1 %v3936_v54  ;;  %v2379_v54 = vpack.c.bf16 %v2375_v52, %v2375_v52 }
 0x6b8   :  { %2614 = vmatpush1.bf16.msra.mxu1 %v3934_v55  ;;  %v2381_v55 = vpack.i.b16 %v2378_v53, %v2378_v53 }
 0x6b9   :  { %2615 = vmatprep.subr.bf16.mxu1 %v3939_v56  ;;  %v2388_v56 = vpack.i.b16 %v2379_v54, %v2379_v54 }
 0x6bb   :  { %v2393_v61 = vrot.slane %v2388_v56, %v4291_v10 }
 0x6bc   :  { %2616 = vmatpush1.bf16.msra.mxu1 %v3937_v57 }
 0x6bd   :  { %2617 = vmatprep.subr.bf16.mxu1 %v3942_v58 }
 0x6c0   :  { %2618 = vmatpush1.bf16.msra.mxu1 %v3940_v59  ;;  %v2386_v59 = vrot.slane %v2381_v55, %v4291_v10 }
 0x6c1   :  { %2619 = vmatprep.subr.bf16.mxu1 %v3945_v18  ;;  %v4003_v18 = vld [vmem:[#allocation9 + $0x58] sm:$0xff]  }
 0x6c4   :  { %2620 = vmatpush1.bf16.msra.mxu1 %v3943_v19  ;;  %v4004_v19 = vld [vmem:[#allocation9 + $0x18] sm:$0xff]  }
 0x6c5   :  { %2621 = vmatprep.subr.bf16.mxu1 %v3948_v20  ;;  %v4005_v20 = vld [vmem:[#allocation9 + $0x60] sm:$0xff]  }
 0x6c8   :  { %2622 = vmatpush1.bf16.msra.mxu1 %v3946_v21  ;;  %v4006_v21 = vld [vmem:[#allocation9 + $0x20] sm:$0xff]  }
 0x75e   :  { %v2083_v4 = vpop.f32.mrb[12].mxu1 }
 0x75f   :  { %v2085_v5 = vpop.f32.mrb[13].mxu1 }
 0x760   :  { %v2087_v7 = vpop.f32.mrb[14].mxu1 }
 0x761   :  { %v2094_v11 = vpack.c.bf16 %v2087_v7, %v2083_v4  ;;  %v2089_v12 = vpop.f32.mrb[15].mxu1  ;;  %v3991_v7 = vld [vmem:[#allocation6 + $0x9e0] ss:$8 sps:$4 sm:$0xff]  }
 0x762   :  { %v2095_v13 = vpack.c.bf16 %v2089_v12, %v2085_v5  ;;  %v3997_v12 = vld [vmem:[#allocation9 + $0x40] sm:$0xff]  }
 0x763   :  { %v2123_v14 = vadd.bf16 %v2115_v6, %v2094_v11  ;;  %v3993_v6 = vld [vmem:[#allocation6 + $0x9e4] ss:$8 sps:$4 sm:$0xff]   ;;  %v3994_v11 = vld [vmem:[#allocation6 + $0x9f0] ss:$8 sps:$4 sm:$0xff]   ;;  %3472 = vmatprep.subr.bf16.mxu1 %v3997_v12 }
 0x764   :  { %v2124_v15 = vadd.bf16 %v2122_v9, %v2095_v13  ;;  %v3996_v9 = vld [vmem:[#allocation6 + $0x9f4] ss:$8 sps:$4 sm:$0xff]   ;;  %v3998_v13 = vld [vmem:[#allocation9] sm:$0xff]  }
 0x765   :  { %v2125_v17 = vmax.bf16 %v4165_v0, %v2123_v14  ;;  %v3999_v14 = vld [vmem:[#allocation9 + $0x48] sm:$0xff]  }
 0x766   :  { %v2126_v16 = vmax.bf16 %v4165_v0, %v2124_v15  ;;  %v4000_v15 = vld [vmem:[#allocation9 + $0x8] sm:$0xff]  }
 0x768   :  { %2352 = vmatprep.mubr.bf16.mxu0 %v2126_v16  ;;  %v4001_v16 = vld [vmem:[#allocation9 + $0x50] sm:$0xff]  }
 0x769   :  { %2353 = vmatmul.mubr.bf16.vlgmr.msra.gmra.mrb[16].mxu0 %v2125_v17  ;;  %v4002_v17 = vld [vmem:[#allocation9 + $0x10] sm:$0xff]  }
 0x76a   :  { %2863 = vmatpush1.bf16.msra.mxu0 %v3949_v22  ;;  %v4007_v22 = vld [vmem:[#allocation9 + $0x68] sm:$0xff]  }
 0x76b   :  { %2864 = vmatprep.subr.bf16.mxu0 %v3954_v24  ;;  %v2642_v24 = vrot.slane %v2635_v23, %v4291_v10 }
 0x76e   :  { %2865 = vmatpush1.bf16.msra.mxu0 %v3952_v25  ;;  %v2646_v25 = vrot.slane %v2635_v23, %v4289_v8 }
 0x76f   :  { %2866 = vmatprep.subr.bf16.mxu0 %v3957_v26  ;;  %v2649_v26 = vpack.c.bf16 %v2642_v24, %v2642_v24 }
 0x772   :  { %2867 = vmatpush1.bf16.msra.mxu0 %v3955_v27  ;;  %v2650_v27 = vpack.c.bf16 %v2646_v25, %v2646_v25 }
 0x773   :  { %2868 = vmatprep.subr.bf16.mxu0 %v3960_v28  ;;  %v2652_v28 = vpack.i.b16 %v2649_v26, %v2649_v26 }
 0x776   :  { %2869 = vmatpush1.bf16.msra.mxu0 %v3958_v29  ;;  %v2659_v29 = vpack.i.b16 %v2650_v27, %v2650_v27 }
 0x777   :  { %2870 = vmatprep.subr.bf16.mxu0 %v3963_v30 }
 0x77a   :  { %2871 = vmatpush1.bf16.msra.mxu0 %v3961_v31 }
 0x77b   :  { %2872 = vmatprep.subr.bf16.mxu0 %v3966_v32  ;;  %v2657_v32 = vrot.slane %v2652_v28, %v4291_v10 }
 0x77e   :  { %2873 = vmatpush1.bf16.msra.mxu0 %v3964_v33 }
 0x77f   :  { %2874 = vmatprep.subr.bf16.mxu0 %v3969_v34  ;;  %v2664_v34 = vrot.slane %v2659_v29, %v4291_v10 }
 0x782   :  { %2875 = vmatpush1.bf16.msra.mxu0 %v3967_v35 }
 0x783   :  { %2876 = vmatprep.subr.bf16.mxu0 %v3972_v36 }
 0x786   :  { %2877 = vmatpush1.bf16.msra.mxu0 %v3970_v37 }
 0x787   :  { %2878 = vmatprep.subr.bf16.mxu0 %v3975_v38 }
 0x78a   :  { %2879 = vmatpush1.bf16.msra.mxu0 %v3973_v39 }
 0x78b   :  { %2880 = vmatprep.subr.bf16.mxu0 %v3978_v40 }
 0x78e   :  { %2881 = vmatpush1.bf16.msra.mxu0 %v3976_v41 }
 0x78f   :  { %2882 = vmatprep.subr.bf16.mxu0 %v3981_v42  ;;  %v4008_v42 = vld [vmem:[#allocation9 + $0x28] sm:$0xff]  }
 0x792   :  { %2883 = vmatpush1.bf16.msra.mxu0 %v3979_v43  ;;  %v4009_v43 = vld [vmem:[#allocation9 + $0x70] sm:$0xff]  }
 0x793   :  { %2884 = vmatprep.subr.bf16.mxu0 %v3984_v44  ;;  %v4010_v44 = vld [vmem:[#allocation9 + $0x30] sm:$0xff]  }
 0x796   :  { %2885 = vmatpush1.bf16.msra.mxu0 %v3982_v45  ;;  %v4011_v45 = vld [vmem:[#allocation9 + $0x78] sm:$0xff]  }
 0x797   :  { %2886 = vmatprep.subr.bf16.mxu0 %v3987_v46  ;;  %v4012_v46 = vld [vmem:[#allocation9 + $0x38] sm:$0xff]  }
 0x79a   :  { %2887 = vmatpush1.bf16.msra.mxu0 %v3985_v47  ;;  %v2906_v47 = vld [vmem:[#allocation7 + $0x11] ss:$8 sm:$0x3] }
 0x79b   :  { %2888 = vmatprep.subr.bf16.mxu0 %v3990_v48  ;;  %v2913_v48 = vrot.slane %v2906_v47, %v4291_v10 }
 0x79d   :  { %v2920_v50 = vpack.c.bf16 %v2913_v48, %v2913_v48 }
 0x79e   :  { %2889 = vmatpush1.bf16.msra.mxu0 %v3988_v49  ;;  %v2917_v49 = vrot.slane %v2906_v47, %v4289_v8 }
 0x79f   :  { %2890 = vmatprep.subr.bf16.mxu0 %v3993_v6  ;;  %v2923_v52 = vpack.i.b16 %v2920_v50, %v2920_v50 }
 0x7a0   :  { %v2921_v51 = vpack.c.bf16 %v2917_v49, %v2917_v49 }
 0x7a1   :  { %v2928_v56 = vrot.slane %v2923_v52, %v4291_v10 }
 0x7a2   :  { %2891 = vmatpush1.bf16.msra.mxu0 %v3991_v7  ;;  %v2930_v53 = vpack.i.b16 %v2921_v51, %v2921_v51 }
 0x7a3   :  { %2892 = vmatprep.subr.bf16.mxu0 %v3996_v9 }
 0x7a6   :  { %2893 = vmatpush1.bf16.msra.mxu0 %v3994_v11 }
 0x83c   :  { %v2354_v57 = vpop.f32.mrb[16].mxu0 }
 0x83d   :  { %v2356_v58 = vpop.f32.mrb[17].mxu0 }
 0x83e   :  { %v2358_v60 = vpop.f32.mrb[18].mxu0 }
 0x83f   :  { %v2365_v62 = vpack.c.bf16 %v2358_v60, %v2354_v57  ;;  %v2360_v63 = vpop.f32.mrb[19].mxu0 }
 0x840   :  { %v2366_v1 = vpack.c.bf16 %v2360_v63, %v2356_v58  ;;  %v2935_v58 = vrot.slane %v2930_v53, %v4291_v10 }
 0x841   :  { %v2394_v2 = vadd.bf16 %v2386_v59, %v2365_v62 }
 0x842   :  { %v2395_v3 = vadd.bf16 %v2393_v61, %v2366_v1 }
 0x843   :  { %v2396_v5 = vmax.bf16 %v4165_v0, %v2394_v2 }
 0x844   :  { %v2397_v4 = vmax.bf16 %v4165_v0, %v2395_v3  ;;  %v3455_v3 = vld [vmem:[#allocation10] ss:$0 sm:$0xff] }
 0x846   :  { %2623 = vmatprep.mubr.bf16.mxu1 %v2397_v4 }
 0x847   :  { %2624 = vmatmul.mubr.bf16.vlgmr.msra.gmra.mrb[16].mxu1 %v2396_v5 }
 0x848   :  { %3473 = vmatpush3.bf16.msra.mxu1 %v3998_v13 }
 0x849   :  { %3474 = vmatprep.subr.bf16.mxu1 %v3999_v14 }
 0x84c   :  { %3475 = vmatpush3.bf16.msra.mxu1 %v4000_v15 }
 0x84d   :  { %3476 = vmatprep.subr.bf16.mxu1 %v4001_v16 }
 0x850   :  { %3477 = vmatpush3.bf16.msra.mxu1 %v4002_v17 }
 0x851   :  { %3478 = vmatprep.subr.bf16.mxu1 %v4003_v18 }
 0x854   :  { %3479 = vmatpush3.bf16.msra.mxu1 %v4004_v19 }
 0x855   :  { %3480 = vmatprep.subr.bf16.mxu1 %v4005_v20 }
 0x858   :  { %3481 = vmatpush3.bf16.msra.mxu1 %v4006_v21 }
 0x859   :  { %3482 = vmatprep.subr.bf16.mxu1 %v4007_v22 }
 0x85c   :  { %3483 = vmatpush3.bf16.msra.mxu1 %v4008_v42 }
 0x85d   :  { %3484 = vmatprep.subr.bf16.mxu1 %v4009_v43 }
 0x860   :  { %3485 = vmatpush3.bf16.msra.mxu1 %v4010_v44 }
 0x861   :  { %3486 = vmatprep.subr.bf16.mxu1 %v4011_v45 }
 0x864   :  { %3487 = vmatpush3.bf16.msra.mxu1 %v4012_v46 }
 0x91a   :  { %v2625_v30 = vpop.f32.mrb[16].mxu1 }
 0x91b   :  { %v2627_v31 = vpop.f32.mrb[17].mxu1 }
 0x91c   :  { %v2629_v33 = vpop.f32.mrb[18].mxu1 }
 0x91d   :  { %v2636_v35 = vpack.c.bf16 %v2629_v33, %v2625_v30  ;;  %v2631_v36 = vpop.f32.mrb[19].mxu1 }
 0x91e   :  { %v2637_v37 = vpack.c.bf16 %v2631_v36, %v2627_v31 }
 0x91f   :  { %v2665_v38 = vadd.bf16 %v2657_v32, %v2636_v35 }
 0x920   :  { %v2666_v39 = vadd.bf16 %v2664_v34, %v2637_v37 }
 0x921   :  { %v2667_v41 = vmax.bf16 %v4165_v0, %v2665_v38 }
 0x922   :  { %v2668_v40 = vmax.bf16 %v4165_v0, %v2666_v39 }
 0x924   :  { %2894 = vmatprep.mubr.bf16.mxu0 %v2668_v40 }
 0x925   :  { %2895 = vmatmul.mubr.bf16.vlgmr.msra.gmra.mrb[20].mxu0 %v2667_v41 }
 0x9f8   :  { %v2896_v54 = vpop.f32.mrb[20].mxu0 }
 0x9f9   :  { %v2898_v55 = vpop.f32.mrb[21].mxu0 }
 0x9fa   :  { %v2900_v57 = vpop.f32.mrb[22].mxu0 }
 0x9fb   :  { %v2907_v59 = vpack.c.bf16 %v2900_v57, %v2896_v54  ;;  %v2902_v60 = vpop.f32.mrb[23].mxu0 }
 0x9fc   :  { %v2908_v61 = vpack.c.bf16 %v2902_v60, %v2898_v55 }
 0x9fd   :  { %v2936_v62 = vadd.bf16 %v2928_v56, %v2907_v59 }
 0x9fe   :  { %v2937_v63 = vadd.bf16 %v2935_v58, %v2908_v61 }
 0x9ff   :  { %v2938_v8 = vmax.bf16 %v4165_v0, %v2936_v62 }
 0xa00   :  { %v2939_v1 = vmax.bf16 %v4165_v0, %v2937_v63 }
 0xa02   :  { %3107 = vmatprep.mubr.bf16.mxu1 %v2939_v1 }
 0xa03   :  { %3108 = vmatmul.mubr.bf16.vlgmr.msra.gmra.mrb[20].mxu1 %v2938_v8 }
 0xad6   :  { %v3488_v2 = vpop.f32.mrb[20].mxu1 }
 0xad7   :  { %v3489_v4 = vpop.f32.mrb[21].mxu1 }
 0xad8   :  { %v3490_v5 = vadd.f32 %v3489_v4, %v3488_v2  ;;  %v3491_v6 = vpop.f32.mrb[22].mxu1 }
 0xad9   :  { %v3492_v7 = vpop.f32.mrb[23].mxu1 }
 0xada   :  { %v3110_v9 = vadd.f32 %v3490_v5, %v3455_v3  ;;  %v3493_v11 = vadd.f32 %v3492_v7, %v3491_v6 }
 0xadc   :  { %3116 = vst [vmem:[%s4370_s7] sm:$0xff] %v3110_v9  ;;  %v3113_v10 = vadd.f32 %v3493_v11, %v3455_v3 }
 0xade   :  { %3117 = vst [vmem:[%s4370_s7 + $0x8] sm:$0xff] %v3113_v10 }
 0xadf   :  { %3122 = vsyncpa [#allocation3], 1 }
 0xae0   :  { %3123 = vsyncpa [#allocation5], 1 }
 0xae1   :  { %3124 = vsyncpa [#allocation8], 1 }
 0xae2   :  { %3125 = vsyncpa [#allocation11], 1 }

</bundles_post_ra>
